<compile_context>
chip_gen: v6e
topology: v6e:2x2x1
jax: 0.10.0
libtpu: 0.0.40
codegen_flags: <defaults>
</compile_context>

<pallas_src>
import jax
import jax.numpy as jnp
from jax import lax
from jax.experimental import pallas as pl
from jax.experimental.pallas import tpu as pltpu


# ----------------------------------------------------------------------------
# helpers
# ----------------------------------------------------------------------------
def _round_up(x, m):
    return ((x + m - 1) // m) * m


def _largest_tile(n, align, cap):
    # Largest multiple of `align` that divides n and is <= cap.
    best = align
    m = align
    while m <= min(n, cap):
        if n % m == 0:
            best = m
        m += align
    return best


def _vmem_capacity_bytes():
    try:
        return int(pltpu.get_tpu_info().vmem_capacity_bytes)
    except Exception:
        return 64 * 1024 * 1024          # v7x-safe fallback


def _vmem_plan():
    cap = _vmem_capacity_bytes()
    vmem_limit = int(min(cap * 3 // 4, 96 * 1024 * 1024))
    budget = int(vmem_limit * 0.8)       # what tile-size heuristics may spend
    return budget, vmem_limit


def _pick_time_chunk(T, Bb, in_p, Hp, budget_bytes, cap=32):
    """Largest multiple-of-8 time chunk that fits the VMEM budget and does not
    waste too many padded timesteps."""
    G4 = 4 * Hp
    fixed = (in_p * G4 * 2 + Hp * G4 * 2       # single-buffered bf16 weights
             + 2 * Bb * Hp * 4                 # h/c carry scratch (f32)
             + 8 * Bb * Hp * 4                 # h0/c0 blocks + hN/cN outputs
             + 4 * G4 * 4)                     # bias blocks
    per_t = (2 * Bb * in_p * 2                 # x chunk, double-buffered bf16
             + 2 * Bb * Hp * 2                 # out chunk, double-buffered bf16
             + Bb * G4 * 4)                    # xg scratch (f32)
    avail = budget_bytes - fixed
    tt_budget = int(avail // per_t) if avail > per_t else 8
    tt_max = max(8, min(cap, tt_budget) // 8 * 8)
    waste_cap = max(T // 8, 7)
    best = 8
    for cand in range(8, tt_max + 1, 8):
        if _round_up(T, cand) - T <= waste_cap:
            best = cand
    return best


# ----------------------------------------------------------------------------
# Pallas kernel: one LSTM layer over the full (padded) sequence.
# grid = (nb, nchunks): batch blocks ("parallel") x time chunks ("arbitrary").
# Gate order follows PyTorch: i, f, g, o.
# ----------------------------------------------------------------------------
def _make_lstm_layer_kernel(Tt, Bb, Hp, T_real, needs_mask, batch_major_out):
    G4 = 4 * Hp

    def kernel(x_ref, h0_ref, c0_ref, b_ref, w_ih_hbm, w_hh_hbm,
               out_ref, hN_ref, cN_ref,
               h_sc, c_sc, xg_sc, w_ih_sc, w_hh_sc, dma_sem):
        ci = pl.program_id(1)

        @pl.when(ci == 0)
        def _init():
            # (Re)load carries for this batch block; fetch the big weights
            # ONCE into single-buffered VMEM scratch (no per-chunk refetch,
            # no wasted second pipeline buffer).
            h_sc[...] = h0_ref[...]
            c_sc[...] = c0_ref[...]
            cp_ih = pltpu.make_async_copy(w_ih_hbm, w_ih_sc, dma_sem.at[0])
            cp_hh = pltpu.make_async_copy(w_hh_hbm, w_hh_sc, dma_sem.at[1])
            cp_ih.start()
            cp_hh.start()
            cp_ih.wait()
            cp_hh.wait()

        in_p = x_ref.shape[-1]

        # Hoisted input projection for the whole chunk: one (Tt*Bb, in_p) x
        # (in_p, 4Hp) MXU matmul with the bias folded in, bf16 operands and
        # f32 accumulation, parked in VMEM scratch.
        x_flat = x_ref[...].reshape(Tt * Bb, in_p)
        xg_sc[...] = (jnp.dot(x_flat, w_ih_sc[...],
                              preferred_element_type=jnp.float32)
                      + b_ref[...])

        w_hh = w_hh_sc[...]

        def step(tt, h, c, dyn):
            start = pl.multiple_of(tt * Bb, Bb) if dyn else tt * Bb
            xg = xg_sc[pl.ds(start, Bb), :]
            g = xg + jnp.dot(h.astype(jnp.bfloat16), w_hh,
                             preferred_element_type=jnp.float32)
            # TODO(synk): gate math could run bf16 on v6e/v7x; kept f32 (v5e
            # has no bf16 VPU/EUP and f32 is numerically safer).
            i_g = jax.nn.sigmoid(g[:, 0 * Hp:1 * Hp])
            f_g = jax.nn.sigmoid(g[:, 1 * Hp:2 * Hp])
            g_g = jnp.tanh(g[:, 2 * Hp:3 * Hp])
            o_g = jax.nn.sigmoid(g[:, 3 * Hp:4 * Hp])
            c_new = f_g * c + i_g * g_g
            h_new = o_g * jnp.tanh(c_new)
            if needs_mask:
                valid = (ci * Tt + tt) < T_real
                h_new = jnp.where(valid, h_new, h)
                c_new = jnp.where(valid, c_new, c)
            h_bf = h_new.astype(jnp.bfloat16)
            if batch_major_out:
                out_ref[:, pl.ds(tt, 1), :] = h_bf[:, None, :]
            else:
                out_ref[pl.ds(tt, 1)] = h_bf[None, :, :]
            return h_new, c_new

        h = h_sc[...]
        c = c_sc[...]
        if Tt <= 16:
            # Small static chunk: fully unrolled Python loop.
            for tt in range(Tt):
                h, c = step(tt, h, c, dyn=False)
        else:
            # Larger chunks: fori_loop keeps code size / vreg pressure bounded.
            def body(tt, carry):
                return step(tt, carry[0], carry[1], dyn=True)
            h, c = lax.fori_loop(0, Tt, body, (h, c), unroll=8)

        h_sc[...] = h
        c_sc[...] = c
        # Cheap insurance: refresh the final-state outputs every chunk.
        hN_ref[...] = h
        cN_ref[...] = c

    return kernel


def lstm_layer_pallas(x_tm, h0, c0, w_ih_t, w_hh_t, bias, *, T_real, Tt,
                      batch_major_out, vmem_limit):
    """One LSTM layer.

    x_tm: (Tp, Bp, in_p) bf16 time-major (Tp = T padded to multiple of Tt).
    Returns (out, hN (Bp,Hp) f32, cN (Bp,Hp) f32) where out is
    (Bp, Tp, Hp) bf16 if batch_major_out else (Tp, Bp, Hp) bf16.
    """
    Tp, Bp, in_p = x_tm.shape
    Hp = w_hh_t.shape[0]
    G4 = 4 * Hp
    nchunks = Tp // Tt
    # Split the batch across two blocks when possible so v7x's second
    # TensorCore can run the (otherwise sequential) recurrence in parallel.
    nb = 2 if (Bp >= 16 and Bp % 16 == 0) else 1
    Bb = Bp // nb
    needs_mask = (Tp != T_real)

    kernel = _make_lstm_layer_kernel(Tt, Bb, Hp, T_real, needs_mask,
                                     batch_major_out)

    if batch_major_out:
        out_seq_shape = jax.ShapeDtypeStruct((Bp, Tp, Hp), jnp.bfloat16)
        out_seq_spec = pl.BlockSpec((Bb, Tt, Hp), lambda b, c: (b, c, 0))
    else:
        out_seq_shape = jax.ShapeDtypeStruct((Tp, Bp, Hp), jnp.bfloat16)
        out_seq_spec = pl.BlockSpec((Tt, Bb, Hp), lambda b, c: (c, b, 0))

    return pl.pallas_call(
        kernel,
        out_shape=(out_seq_shape,
                   jax.ShapeDtypeStruct((Bp, Hp), jnp.float32),
                   jax.ShapeDtypeStruct((Bp, Hp), jnp.float32)),
        grid_spec=pltpu.PrefetchScalarGridSpec(
            num_scalar_prefetch=0,
            grid=(nb, nchunks),
            in_specs=[
                pl.BlockSpec((Tt, Bb, in_p), lambda b, c: (c, b, 0)),  # x chunk
                pl.BlockSpec((Bb, Hp), lambda b, c: (b, 0)),           # h0
                pl.BlockSpec((Bb, Hp), lambda b, c: (b, 0)),           # c0
                pl.BlockSpec((1, G4), lambda b, c: (0, 0)),            # bias
                pl.BlockSpec(memory_space=pl.ANY),                     # W_ih^T (HBM)
                pl.BlockSpec(memory_space=pl.ANY),                     # W_hh^T (HBM)
            ],
            out_specs=(
                out_seq_spec,                                          # out seq
                pl.BlockSpec((Bb, Hp), lambda b, c: (b, 0)),           # h_N
                pl.BlockSpec((Bb, Hp), lambda b, c: (b, 0)),           # c_N
            ),
            scratch_shapes=[
                pltpu.VMEM((Bb, Hp), jnp.float32),          # h carry
                pltpu.VMEM((Bb, Hp), jnp.float32),          # c carry
                pltpu.VMEM((Tt * Bb, G4), jnp.float32),     # chunk gate pre-acts
                pltpu.VMEM((in_p, G4), jnp.bfloat16),       # resident W_ih^T
                pltpu.VMEM((Hp, G4), jnp.bfloat16),         # resident W_hh^T
                pltpu.SemaphoreType.DMA((2,)),
            ],
        ),
        compiler_params=pltpu.CompilerParams(
            dimension_semantics=("parallel", "arbitrary"),
            vmem_limit_bytes=vmem_limit),
    )(x_tm, h0, c0, bias, w_ih_t, w_hh_t)


# ----------------------------------------------------------------------------
# Pallas kernel: final Linear (fc).  Vocab axis outermost so the (Hp, Vp)
# weight streams from HBM exactly once; row tiles as large as VMEM allows.
# ----------------------------------------------------------------------------
def _fc_kernel(x_ref, w_ref, b_ref, o_ref):
    o_ref[...] = (jnp.dot(x_ref[...], w_ref[...],
                          preferred_element_type=jnp.float32)
                  + b_ref[...]).astype(o_ref.dtype)


def fc_pallas(x, w_t, b, budget_bytes, vmem_limit):
    """x: (N, Hp) bf16, w_t: (Hp, Vp) bf16, b: (1, Vp) f32 -> (N, Vp) f32."""
    N, Hp = x.shape
    Vp = w_t.shape[1]
    tile_v = _largest_tile(Vp, 128, 512)
    fixed = 2 * Hp * tile_v * 2 + 2 * tile_v * 4          # weight + bias (x2 buf)
    per_row = 2 * Hp * 2 + 2 * tile_v * 4                 # x (bf16) + out (f32), x2 buf
    max_rows = max(8, (budget_bytes - fixed) // per_row)
    tile_n = int(min(_round_up(N, 8), max_rows, 4096))
    tile_n = max(8, (tile_n // 8) * 8)
    Np = _round_up(N, tile_n)
    if Np != N:
        x = jnp.pad(x, ((0, Np - N), (0, 0)))

    out = pl.pallas_call(
        _fc_kernel,
        out_shape=jax.ShapeDtypeStruct((Np, Vp), jnp.float32),
        grid_spec=pltpu.PrefetchScalarGridSpec(
            num_scalar_prefetch=0,
            grid=(Vp // tile_v, Np // tile_n),     # vocab outermost
            in_specs=[
                pl.BlockSpec((tile_n, Hp), lambda j, i: (i, 0)),
                pl.BlockSpec((Hp, tile_v), lambda j, i: (0, j)),
                pl.BlockSpec((1, tile_v), lambda j, i: (0, j)),
            ],
            out_specs=pl.BlockSpec((tile_n, tile_v), lambda j, i: (i, j)),
        ),
        compiler_params=pltpu.CompilerParams(
            dimension_semantics=("parallel", "parallel"),
            vmem_limit_bytes=vmem_limit),
    )(x, w_t, b)
    return out[:N] if Np != N else out


# ----------------------------------------------------------------------------
# Full model forward (mirrors LSTMModel.forward, inference semantics).
# ----------------------------------------------------------------------------
def lstm_model_forward(token_ids, hidden, params):
    """token_ids: (B, T) int32.  hidden = (h0, c0), each (L, B, H).
    Returns (logits (B*T, V), (h_n, c_n))."""
    dims = params["dims"]
    H, V, Hp, Ep = dims["H"], dims["V"], dims["Hp"], dims["Ep"]
    h0_all, c0_all = hidden
    B, T = token_ids.shape
    L = h0_all.shape[0]
    Bp = _round_up(B, 8)

    budget, vmem_limit = _vmem_plan()
    nb = 2 if (Bp >= 16 and Bp % 16 == 0) else 1
    Tt = _pick_time_chunk(T, Bp // nb, max(Ep, Hp), Hp, budget)
    Tp = _round_up(T, Tt)

    # Pad batch; gather bf16 embeddings directly in TIME-MAJOR order
    # (transposing only the tiny int index array, never the activations).
    ids_p = jnp.pad(token_ids, ((0, Bp - B), (0, 0)))
    x = params["embedding_p"][ids_p.T]                       # (T, Bp, Ep) bf16
    if Tp != T:
        x = jnp.pad(x, ((0, Tp - T), (0, 0), (0, 0)))
    h0p = jnp.pad(h0_all, ((0, 0), (0, Bp - B), (0, Hp - H))).astype(jnp.float32)
    c0p = jnp.pad(c0_all, ((0, 0), (0, Bp - B), (0, Hp - H))).astype(jnp.float32)

    h_finals, c_finals = [], []
    for layer in range(L):
        w_ih_t, w_hh_t, bias = params["lstm"][layer]
        last = (layer == L - 1)
        x, h_n, c_n = lstm_layer_pallas(
            x, h0p[layer], c0p[layer], w_ih_t, w_hh_t, bias,
            T_real=T, Tt=Tt, batch_major_out=last, vmem_limit=vmem_limit)
        h_finals.append(h_n[:B, :H])
        c_finals.append(c_n[:B, :H])
        # TODO(synk): nn.LSTM applies dropout(p=0.3) between layers only in
        # training mode; inference semantics (identity) implemented here.

    # Final layer already wrote batch-major (Bp, Tp, Hp) bf16 -> no transpose.
    if Tp != T:
        x = x[:, :T, :]
    flat = x.reshape(Bp * T, Hp)
    logits_p = fc_pallas(flat, params["fc_w_t"], params["fc_b"],
                         budget, vmem_limit)
    logits = logits_p[:B * T, :V]          # padded batches / vocab lanes trail

    return logits, (jnp.stack(h_finals, 0), jnp.stack(c_finals, 0))


# ----------------------------------------------------------------------------
# Parameter init: PyTorch-style uniform(-1/sqrt(H), 1/sqrt(H)).
# Kernel copies are transposed, gate-padded to (8,128) tiles, and bf16.
# ----------------------------------------------------------------------------
def _pad_gate_weight(w, in_p, H, Hp):
    # w: (4H, in) PyTorch layout -> (in_p, 4*Hp) transposed, per-gate padded.
    in_dim = w.shape[1]
    wt = w.T.reshape(in_dim, 4, H)
    wt = jnp.pad(wt, ((0, in_p - in_dim), (0, 0), (0, Hp - H)))
    return wt.reshape(in_p, 4 * Hp)


def _pad_gate_bias(b, H, Hp):
    bb = jnp.pad(b.reshape(4, H), ((0, 0), (0, Hp - H)))
    return bb.reshape(1, 4 * Hp)


def init_params(key, vocab_size, embed_size, hidden_size, num_layers):
    E, H, V = embed_size, hidden_size, vocab_size
    Ep, Hp, Vp = _round_up(E, 128), _round_up(H, 128), _round_up(V, 128)
    bound = 1.0 / (H ** 0.5)

    keys = jax.random.split(key, 3 + 4 * num_layers)
    k_it = iter(keys)

    params = {"dims": dict(E=E, H=H, V=V, Ep=Ep, Hp=Hp, Vp=Vp)}

    emb = jax.random.normal(next(k_it), (V, E), jnp.float32)
    params["embedding_ref"] = emb
    params["embedding_p"] = jnp.pad(emb, ((0, 0), (0, Ep - E))).astype(jnp.bfloat16)

    lstm_kernel, lstm_ref = [], []
    for layer in range(num_layers):
        in_size = E if layer == 0 else H
        in_p = Ep if layer == 0 else Hp
        w_ih = jax.random.uniform(next(k_it), (4 * H, in_size),
                                  jnp.float32, -bound, bound)
        w_hh = jax.random.uniform(next(k_it), (4 * H, H),
                                  jnp.float32, -bound, bound)
        b_ih = jax.random.uniform(next(k_it), (4 * H,),
                                  jnp.float32, -bound, bound)
        b_hh = jax.random.uniform(next(k_it), (4 * H,),
                                  jnp.float32, -bound, bound)
        lstm_ref.append((w_ih, w_hh, b_ih, b_hh))
        lstm_kernel.append((
            _pad_gate_weight(w_ih, in_p, H, Hp).astype(jnp.bfloat16),
            _pad_gate_weight(w_hh, Hp, H, Hp).astype(jnp.bfloat16),
            _pad_gate_bias(b_ih + b_hh, H, Hp),          # f32, bias fused
        ))
    params["lstm"] = lstm_kernel
    params["lstm_ref"] = lstm_ref

    fc_w = jax.random.uniform(next(k_it), (V, H), jnp.float32, -bound, bound)
    fc_b = jax.random.uniform(next(k_it), (V,), jnp.float32, -bound, bound)
    params["fc_ref"] = (fc_w, fc_b)
    params["fc_w_t"] = jnp.pad(fc_w.T, ((0, Hp - H), (0, Vp - V))).astype(jnp.bfloat16)
    params["fc_b"] = jnp.pad(fc_b, (0, Vp - V))[None, :]
    return params


# ----------------------------------------------------------------------------
# Pure-JAX f32 reference (unpadded weights) for correctness checking.
# ----------------------------------------------------------------------------
def reference_forward(token_ids, hidden, params):
    H = params["dims"]["H"]
    h0_all, c0_all = hidden
    x = params["embedding_ref"][token_ids]                   # (B, T, E)
    B, T, _ = x.shape
    L = h0_all.shape[0]
    h_fs, c_fs = [], []
    for layer in range(L):
        w_ih, w_hh, b_ih, b_hh = params["lstm_ref"][layer]
        h, c = h0_all[layer], c0_all[layer]
        outs = []
        for t in range(T):
            gates = x[:, t, :] @ w_ih.T + h @ w_hh.T + b_ih + b_hh
            i_g = jax.nn.sigmoid(gates[:, 0 * H:1 * H])
            f_g = jax.nn.sigmoid(gates[:, 1 * H:2 * H])
            g_g = jnp.tanh(gates[:, 2 * H:3 * H])
            o_g = jax.nn.sigmoid(gates[:, 3 * H:4 * H])
            c = f_g * c + i_g * g_g
            h = o_g * jnp.tanh(c)
            outs.append(h)
        x = jnp.stack(outs, 1)
        h_fs.append(h)
        c_fs.append(c)
    fc_w, fc_b = params["fc_ref"]
    logits = x.reshape(B * T, H) @ fc_w.T + fc_b
    return logits, (jnp.stack(h_fs, 0), jnp.stack(c_fs, 0))


if __name__ == "__main__":
    vocab_size, embed_size, hidden_size, num_layers = 50, 32, 32, 2
    B, T = 2, 8

    key = jax.random.PRNGKey(0)
    k_param, k_ids = jax.random.split(key)
    params = init_params(k_param, vocab_size, embed_size, hidden_size,
                         num_layers)

    token_ids = jax.random.randint(k_ids, (B, T), 0, vocab_size, jnp.int32)
    # init_hidden(batch_size): zeros of shape (num_layers, B, H)
    h0 = jnp.zeros((num_layers, B, hidden_size), jnp.float32)
    c0 = jnp.zeros((num_layers, B, hidden_size), jnp.float32)

    logits, (h_n, c_n) = lstm_model_forward(token_ids, (h0, c0), params)
    jax.block_until_ready((logits, h_n, c_n))

    # Correctness vs. pure-JAX f32 reference (bf16 matmul operands -> loose tol).
    ref_logits, (ref_h, ref_c) = reference_forward(token_ids, (h0, c0), params)
    assert logits.shape == (B * T, vocab_size)
    assert h_n.shape == (num_layers, B, hidden_size)
    assert c_n.shape == (num_layers, B, hidden_size)
    assert jnp.allclose(logits, ref_logits, atol=5e-2, rtol=5e-2), \
        float(jnp.max(jnp.abs(logits - ref_logits)))
    assert jnp.allclose(h_n, ref_h, atol=5e-2, rtol=5e-2)
    assert jnp.allclose(c_n, ref_c, atol=5e-2, rtol=5e-2)

    print("KERNEL_OK")
</pallas_src>

<mosaic_0001>
module attributes {stable_mosaic.version = 11 : i64} {
  func.func @kernel(%arg0: i32, %arg1: i32, %arg2: memref<8x8x128xbf16, #tpu.memory_space<vmem>>, %arg3: memref<8x128xf32, #tpu.memory_space<vmem>>, %arg4: memref<8x128xf32, #tpu.memory_space<vmem>>, %arg5: memref<1x512xf32, #tpu.memory_space<vmem>>, %arg6: memref<128x512xbf16, #tpu.memory_space<any>>, %arg7: memref<128x512xbf16, #tpu.memory_space<any>>, %arg8: memref<8x8x128xbf16, #tpu.memory_space<vmem>>, %arg9: memref<8x128xf32, #tpu.memory_space<vmem>>, %arg10: memref<8x128xf32, #tpu.memory_space<vmem>>, %arg11: memref<8x128xf32, #tpu.memory_space<vmem>>, %arg12: memref<8x128xf32, #tpu.memory_space<vmem>>, %arg13: memref<64x512xf32, #tpu.memory_space<vmem>>, %arg14: memref<128x512xbf16, #tpu.memory_space<vmem>>, %arg15: memref<128x512xbf16, #tpu.memory_space<vmem>>, %arg16: memref<2x!tpu.dma_semaphore, #tpu.memory_space<semaphore_mem>>) attributes {dimension_semantics = [#tpu.dimension_semantics<parallel>, #tpu.dimension_semantics<arbitrary>], iteration_bounds = array<i64: 1, 1>, scalar_prefetch = 0 : i64, scratch_operands = 6 : i64, tpu.core_type = #tpu.core_type<tc>, window_params = [{transform_indices = @transform_0, window_bounds = array<i64: 8, 8, 128>}, {transform_indices = @transform_1, window_bounds = array<i64: 8, 128>}, {transform_indices = @transform_2, window_bounds = array<i64: 8, 128>}, {pipeline_mode = #tpu.pipeline_mode<synchronous>, transform_indices = @transform_3, window_bounds = array<i64: 1, 512>}, {}, {}, {transform_indices = @transform_6, window_bounds = array<i64: 8, 8, 128>}, {transform_indices = @transform_7, window_bounds = array<i64: 8, 128>}, {transform_indices = @transform_8, window_bounds = array<i64: 8, 128>}]} {
    %c0_i32 = arith.constant 0 : i32
    %0 = arith.cmpi eq, %arg1, %c0_i32 : i32
    %1 = arith.extui %0 : i1 to i32
    %c0_i32_0 = arith.constant 0 : i32
    %2 = arith.cmpi ne, %1, %c0_i32_0 : i32
    scf.if %2 {
      %c0_81 = arith.constant 0 : index
      %c0_82 = arith.constant 0 : index
      %274 = vector.load %arg3[%c0_81, %c0_82] : memref<8x128xf32, #tpu.memory_space<vmem>>, vector<8x128xf32>
      %c0_83 = arith.constant 0 : index
      %c0_84 = arith.constant 0 : index
      %275 = vector.load %arg11[%c0_83, %c0_84] : memref<8x128xf32, #tpu.memory_space<vmem>>, vector<8x128xf32>
      tpu.vector_store %arg11[%c0_83, %c0_84], %274 {strides = array<i32>} : memref<8x128xf32, #tpu.memory_space<vmem>>, vector<8x128xf32>,
      %c0_85 = arith.constant 0 : index
      %c0_86 = arith.constant 0 : index
      %276 = vector.load %arg4[%c0_85, %c0_86] : memref<8x128xf32, #tpu.memory_space<vmem>>, vector<8x128xf32>
      %c0_87 = arith.constant 0 : index
      %c0_88 = arith.constant 0 : index
      %277 = vector.load %arg12[%c0_87, %c0_88] : memref<8x128xf32, #tpu.memory_space<vmem>>, vector<8x128xf32>
      tpu.vector_store %arg12[%c0_87, %c0_88], %276 {strides = array<i32>} : memref<8x128xf32, #tpu.memory_space<vmem>>, vector<8x128xf32>,
      %c0_i32_89 = arith.constant 0 : i32
      %278 = tpu.memref_slice %arg16[%c0_i32_89] : memref<2x!tpu.dma_semaphore, #tpu.memory_space<semaphore_mem>> -> memref<1x!tpu.dma_semaphore, #tpu.memory_space<semaphore_mem>>
      %279 = tpu.memref_squeeze %278 : memref<1x!tpu.dma_semaphore, #tpu.memory_space<semaphore_mem>> -> memref<!tpu.dma_semaphore, #tpu.memory_space<semaphore_mem>>
      tpu.enqueue_dma source(%arg6 : memref<128x512xbf16, #tpu.memory_space<any>>) target(%arg14 : memref<128x512xbf16, #tpu.memory_space<vmem>>) target_semaphore(%279 : memref<!tpu.dma_semaphore, #tpu.memory_space<semaphore_mem>>)
      %c1_i32 = arith.constant 1 : i32
      %280 = tpu.memref_slice %arg16[%c1_i32] : memref<2x!tpu.dma_semaphore, #tpu.memory_space<semaphore_mem>> -> memref<1x!tpu.dma_semaphore, #tpu.memory_space<semaphore_mem>>
      %281 = tpu.memref_squeeze %280 : memref<1x!tpu.dma_semaphore, #tpu.memory_space<semaphore_mem>> -> memref<!tpu.dma_semaphore, #tpu.memory_space<semaphore_mem>>
      tpu.enqueue_dma source(%arg7 : memref<128x512xbf16, #tpu.memory_space<any>>) target(%arg15 : memref<128x512xbf16, #tpu.memory_space<vmem>>) target_semaphore(%281 : memref<!tpu.dma_semaphore, #tpu.memory_space<semaphore_mem>>)
      %c0_i32_90 = arith.constant 0 : i32
      %282 = tpu.memref_slice %arg16[%c0_i32_90] : memref<2x!tpu.dma_semaphore, #tpu.memory_space<semaphore_mem>> -> memref<1x!tpu.dma_semaphore, #tpu.memory_space<semaphore_mem>>
      %283 = tpu.memref_squeeze %282 : memref<1x!tpu.dma_semaphore, #tpu.memory_space<semaphore_mem>> -> memref<!tpu.dma_semaphore, #tpu.memory_space<semaphore_mem>>
      tpu.wait_dma2 semaphore(%283 : memref<!tpu.dma_semaphore, #tpu.memory_space<semaphore_mem>>) src(%arg6 : memref<128x512xbf16, #tpu.memory_space<any>>) dst(%arg14 : memref<128x512xbf16, #tpu.memory_space<vmem>>)
      %c1_i32_91 = arith.constant 1 : i32
      %284 = tpu.memref_slice %arg16[%c1_i32_91] : memref<2x!tpu.dma_semaphore, #tpu.memory_space<semaphore_mem>> -> memref<1x!tpu.dma_semaphore, #tpu.memory_space<semaphore_mem>>
      %285 = tpu.memref_squeeze %284 : memref<1x!tpu.dma_semaphore, #tpu.memory_space<semaphore_mem>> -> memref<!tpu.dma_semaphore, #tpu.memory_space<semaphore_mem>>
      tpu.wait_dma2 semaphore(%285 : memref<!tpu.dma_semaphore, #tpu.memory_space<semaphore_mem>>) src(%arg7 : memref<128x512xbf16, #tpu.memory_space<any>>) dst(%arg15 : memref<128x512xbf16, #tpu.memory_space<vmem>>)
    } else {
    }
    %c0 = arith.constant 0 : index
    %c0_1 = arith.constant 0 : index
    %c0_2 = arith.constant 0 : index
    %3 = vector.load %arg2[%c0, %c0_1, %c0_2] : memref<8x8x128xbf16, #tpu.memory_space<vmem>>, vector<8x8x128xbf16>
    %4 = vector.shape_cast %3 : vector<8x8x128xbf16> to vector<64x128xbf16>
    %c0_3 = arith.constant 0 : index
    %c0_4 = arith.constant 0 : index
    %5 = vector.load %arg14[%c0_3, %c0_4] : memref<128x512xbf16, #tpu.memory_space<vmem>>, vector<128x512xbf16>
    %cst = arith.constant dense<0.000000e+00> : vector<64x512xf32>
    %6 = tpu.matmul %4, %5, %cst {dimension_numbers = #tpu.dot_dimension_numbers<[1], [0], [0], [1], [0, 0, 1, 1], [], []>} : vector<64x128xbf16>, vector<128x512xbf16>, vector<64x512xf32> -> vector<64x512xf32>
    %c0_5 = arith.constant 0 : index
    %c0_6 = arith.constant 0 : index
    %7 = vector.load %arg5[%c0_5, %c0_6] : memref<1x512xf32, #tpu.memory_space<vmem>>, vector<1x512xf32>
    %8 = vector.broadcast %7 : vector<1x512xf32> to vector<64x512xf32>
    %9 = arith.addf %6, %8 : vector<64x512xf32>
    %c0_7 = arith.constant 0 : index
    %c0_8 = arith.constant 0 : index
    %10 = vector.load %arg13[%c0_7, %c0_8] : memref<64x512xf32, #tpu.memory_space<vmem>>, vector<64x512xf32>
    tpu.vector_store %arg13[%c0_7, %c0_8], %9 {strides = array<i32>} : memref<64x512xf32, #tpu.memory_space<vmem>>, vector<64x512xf32>,
    %c0_9 = arith.constant 0 : index
    %c0_10 = arith.constant 0 : index
    %11 = vector.load %arg15[%c0_9, %c0_10] : memref<128x512xbf16, #tpu.memory_space<vmem>>, vector<128x512xbf16>
    %c0_11 = arith.constant 0 : index
    %c0_12 = arith.constant 0 : index
    %12 = vector.load %arg11[%c0_11, %c0_12] : memref<8x128xf32, #tpu.memory_space<vmem>>, vector<8x128xf32>
    %c0_13 = arith.constant 0 : index
    %c0_14 = arith.constant 0 : index
    %13 = vector.load %arg12[%c0_13, %c0_14] : memref<8x128xf32, #tpu.memory_space<vmem>>, vector<8x128xf32>
    %c0_15 = arith.constant 0 : index
    %c0_16 = arith.constant 0 : index
    %14 = vector.load %arg13[%c0_15, %c0_16] : memref<64x512xf32, #tpu.memory_space<vmem>>, vector<8x512xf32>
    %15 = arith.truncf %12 : vector<8x128xf32> to vector<8x128xbf16>
    %cst_17 = arith.constant dense<0.000000e+00> : vector<8x512xf32>
    %16 = tpu.matmul %15, %11, %cst_17 {dimension_numbers = #tpu.dot_dimension_numbers<[1], [0], [0], [1], [0, 0, 1, 1], [], []>} : vector<8x128xbf16>, vector<128x512xbf16>, vector<8x512xf32> -> vector<8x512xf32>
    %17 = arith.addf %14, %16 : vector<8x512xf32>
    %18 = vector.extract_strided_slice %17 {offsets = [0, 0], sizes = [8, 128], strides = [1, 1]} : vector<8x512xf32> to vector<8x128xf32>
    %19 = arith.negf %18 : vector<8x128xf32>
    %20 = math.exp %19 : vector<8x128xf32>
    %cst_18 = arith.constant 1.000000e+00 : f32
    %21 = vector.broadcast %cst_18 : f32 to vector<8x128xf32>
    %22 = arith.addf %21, %20 : vector<8x128xf32>
    %23 = arith.divf %21, %22 : vector<8x128xf32>
    %24 = vector.extract_strided_slice %17 {offsets = [0, 128], sizes = [8, 128], strides = [1, 1]} : vector<8x512xf32> to vector<8x128xf32>
    %25 = arith.negf %24 : vector<8x128xf32>
    %26 = math.exp %25 : vector<8x128xf32>
    %cst_19 = arith.constant 1.000000e+00 : f32
    %27 = vector.broadcast %cst_19 : f32 to vector<8x128xf32>
    %28 = arith.addf %27, %26 : vector<8x128xf32>
    %29 = arith.divf %27, %28 : vector<8x128xf32>
    %30 = vector.extract_strided_slice %17 {offsets = [0, 256], sizes = [8, 128], strides = [1, 1]} : vector<8x512xf32> to vector<8x128xf32>
    %31 = math.tanh %30 : vector<8x128xf32>
    %32 = vector.extract_strided_slice %17 {offsets = [0, 384], sizes = [8, 128], strides = [1, 1]} : vector<8x512xf32> to vector<8x128xf32>
    %33 = arith.negf %32 : vector<8x128xf32>
    %34 = math.exp %33 : vector<8x128xf32>
    %cst_20 = arith.constant 1.000000e+00 : f32
    %35 = vector.broadcast %cst_20 : f32 to vector<8x128xf32>
    %36 = arith.addf %35, %34 : vector<8x128xf32>
    %37 = arith.divf %35, %36 : vector<8x128xf32>
    %38 = arith.mulf %29, %13 : vector<8x128xf32>
    %39 = arith.mulf %23, %31 : vector<8x128xf32>
    %40 = arith.addf %38, %39 : vector<8x128xf32>
    %41 = math.tanh %40 : vector<8x128xf32>
    %42 = arith.mulf %37, %41 : vector<8x128xf32>
    %43 = arith.truncf %42 : vector<8x128xf32> to vector<8x128xbf16>
    %44 = vector.shape_cast %43 : vector<8x128xbf16> to vector<1x8x128xbf16>
    %c0_21 = arith.constant 0 : index
    %c0_22 = arith.constant 0 : index
    %c0_23 = arith.constant 0 : index
    %45 = vector.load %arg8[%c0_21, %c0_22, %c0_23] : memref<8x8x128xbf16, #tpu.memory_space<vmem>>, vector<1x8x128xbf16>
    tpu.vector_store %arg8[%c0_21, %c0_22, %c0_23], %44 {strides = array<i32>} : memref<8x8x128xbf16, #tpu.memory_space<vmem>>, vector<1x8x128xbf16>,
    %c8 = arith.constant 8 : index
    %c0_24 = arith.constant 0 : index
    %46 = vector.load %arg13[%c8, %c0_24] : memref<64x512xf32, #tpu.memory_space<vmem>>, vector<8x512xf32>
    %47 = arith.truncf %42 : vector<8x128xf32> to vector<8x128xbf16>
    %cst_25 = arith.constant dense<0.000000e+00> : vector<8x512xf32>
    %48 = tpu.matmul %47, %11, %cst_25 {dimension_numbers = #tpu.dot_dimension_numbers<[1], [0], [0], [1], [0, 0, 1, 1], [], []>} : vector<8x128xbf16>, vector<128x512xbf16>, vector<8x512xf32> -> vector<8x512xf32>
    %49 = arith.addf %46, %48 : vector<8x512xf32>
    %50 = vector.extract_strided_slice %49 {offsets = [0, 0], sizes = [8, 128], strides = [1, 1]} : vector<8x512xf32> to vector<8x128xf32>
    %51 = arith.negf %50 : vector<8x128xf32>
    %52 = math.exp %51 : vector<8x128xf32>
    %cst_26 = arith.constant 1.000000e+00 : f32
    %53 = vector.broadcast %cst_26 : f32 to vector<8x128xf32>
    %54 = arith.addf %53, %52 : vector<8x128xf32>
    %55 = arith.divf %53, %54 : vector<8x128xf32>
    %56 = vector.extract_strided_slice %49 {offsets = [0, 128], sizes = [8, 128], strides = [1, 1]} : vector<8x512xf32> to vector<8x128xf32>
    %57 = arith.negf %56 : vector<8x128xf32>
    %58 = math.exp %57 : vector<8x128xf32>
    %cst_27 = arith.constant 1.000000e+00 : f32
    %59 = vector.broadcast %cst_27 : f32 to vector<8x128xf32>
    %60 = arith.addf %59, %58 : vector<8x128xf32>
    %61 = arith.divf %59, %60 : vector<8x128xf32>
    %62 = vector.extract_strided_slice %49 {offsets = [0, 256], sizes = [8, 128], strides = [1, 1]} : vector<8x512xf32> to vector<8x128xf32>
    %63 = math.tanh %62 : vector<8x128xf32>
    %64 = vector.extract_strided_slice %49 {offsets = [0, 384], sizes = [8, 128], strides = [1, 1]} : vector<8x512xf32> to vector<8x128xf32>
    %65 = arith.negf %64 : vector<8x128xf32>
    %66 = math.exp %65 : vector<8x128xf32>
    %cst_28 = arith.constant 1.000000e+00 : f32
    %67 = vector.broadcast %cst_28 : f32 to vector<8x128xf32>
    %68 = arith.addf %67, %66 : vector<8x128xf32>
    %69 = arith.divf %67, %68 : vector<8x128xf32>
    %70 = arith.mulf %61, %40 : vector<8x128xf32>
    %71 = arith.mulf %55, %63 : vector<8x128xf32>
    %72 = arith.addf %70, %71 : vector<8x128xf32>
    %73 = math.tanh %72 : vector<8x128xf32>
    %74 = arith.mulf %69, %73 : vector<8x128xf32>
    %75 = arith.truncf %74 : vector<8x128xf32> to vector<8x128xbf16>
    %76 = vector.shape_cast %75 : vector<8x128xbf16> to vector<1x8x128xbf16>
    %c1 = arith.constant 1 : index
    %c0_29 = arith.constant 0 : index
    %c0_30 = arith.constant 0 : index
    %77 = vector.load %arg8[%c1, %c0_29, %c0_30] : memref<8x8x128xbf16, #tpu.memory_space<vmem>>, vector<1x8x128xbf16>
    tpu.vector_store %arg8[%c1, %c0_29, %c0_30], %76 {strides = array<i32>} : memref<8x8x128xbf16, #tpu.memory_space<vmem>>, vector<1x8x128xbf16>,
    %c16 = arith.constant 16 : index
    %c0_31 = arith.constant 0 : index
    %78 = vector.load %arg13[%c16, %c0_31] : memref<64x512xf32, #tpu.memory_space<vmem>>, vector<8x512xf32>
    %79 = arith.truncf %74 : vector<8x128xf32> to vector<8x128xbf16>
    %cst_32 = arith.constant dense<0.000000e+00> : vector<8x512xf32>
    %80 = tpu.matmul %79, %11, %cst_32 {dimension_numbers = #tpu.dot_dimension_numbers<[1], [0], [0], [1], [0, 0, 1, 1], [], []>} : vector<8x128xbf16>, vector<128x512xbf16>, vector<8x512xf32> -> vector<8x512xf32>
    %81 = arith.addf %78, %80 : vector<8x512xf32>
    %82 = vector.extract_strided_slice %81 {offsets = [0, 0], sizes = [8, 128], strides = [1, 1]} : vector<8x512xf32> to vector<8x128xf32>
    %83 = arith.negf %82 : vector<8x128xf32>
    %84 = math.exp %83 : vector<8x128xf32>
    %cst_33 = arith.constant 1.000000e+00 : f32
    %85 = vector.broadcast %cst_33 : f32 to vector<8x128xf32>
    %86 = arith.addf %85, %84 : vector<8x128xf32>
    %87 = arith.divf %85, %86 : vector<8x128xf32>
    %88 = vector.extract_strided_slice %81 {offsets = [0, 128], sizes = [8, 128], strides = [1, 1]} : vector<8x512xf32> to vector<8x128xf32>
    %89 = arith.negf %88 : vector<8x128xf32>
    %90 = math.exp %89 : vector<8x128xf32>
    %cst_34 = arith.constant 1.000000e+00 : f32
    %91 = vector.broadcast %cst_34 : f32 to vector<8x128xf32>
    %92 = arith.addf %91, %90 : vector<8x128xf32>
    %93 = arith.divf %91, %92 : vector<8x128xf32>
    %94 = vector.extract_strided_slice %81 {offsets = [0, 256], sizes = [8, 128], strides = [1, 1]} : vector<8x512xf32> to vector<8x128xf32>
    %95 = math.tanh %94 : vector<8x128xf32>
    %96 = vector.extract_strided_slice %81 {offsets = [0, 384], sizes = [8, 128], strides = [1, 1]} : vector<8x512xf32> to vector<8x128xf32>
    %97 = arith.negf %96 : vector<8x128xf32>
    %98 = math.exp %97 : vector<8x128xf32>
    %cst_35 = arith.constant 1.000000e+00 : f32
    %99 = vector.broadcast %cst_35 : f32 to vector<8x128xf32>
    %100 = arith.addf %99, %98 : vector<8x128xf32>
    %101 = arith.divf %99, %100 : vector<8x128xf32>
    %102 = arith.mulf %93, %72 : vector<8x128xf32>
    %103 = arith.mulf %87, %95 : vector<8x128xf32>
    %104 = arith.addf %102, %103 : vector<8x128xf32>
    %105 = math.tanh %104 : vector<8x128xf32>
    %106 = arith.mulf %101, %105 : vector<8x128xf32>
    %107 = arith.truncf %106 : vector<8x128xf32> to vector<8x128xbf16>
    %108 = vector.shape_cast %107 : vector<8x128xbf16> to vector<1x8x128xbf16>
    %c2 = arith.constant 2 : index
    %c0_36 = arith.constant 0 : index
    %c0_37 = arith.constant 0 : index
    %109 = vector.load %arg8[%c2, %c0_36, %c0_37] : memref<8x8x128xbf16, #tpu.memory_space<vmem>>, vector<1x8x128xbf16>
    tpu.vector_store %arg8[%c2, %c0_36, %c0_37], %108 {strides = array<i32>} : memref<8x8x128xbf16, #tpu.memory_space<vmem>>, vector<1x8x128xbf16>,
    %c24 = arith.constant 24 : index
    %c0_38 = arith.constant 0 : index
    %110 = vector.load %arg13[%c24, %c0_38] : memref<64x512xf32, #tpu.memory_space<vmem>>, vector<8x512xf32>
    %111 = arith.truncf %106 : vector<8x128xf32> to vector<8x128xbf16>
    %cst_39 = arith.constant dense<0.000000e+00> : vector<8x512xf32>
    %112 = tpu.matmul %111, %11, %cst_39 {dimension_numbers = #tpu.dot_dimension_numbers<[1], [0], [0], [1], [0, 0, 1, 1], [], []>} : vector<8x128xbf16>, vector<128x512xbf16>, vector<8x512xf32> -> vector<8x512xf32>
    %113 = arith.addf %110, %112 : vector<8x512xf32>
    %114 = vector.extract_strided_slice %113 {offsets = [0, 0], sizes = [8, 128], strides = [1, 1]} : vector<8x512xf32> to vector<8x128xf32>
    %115 = arith.negf %114 : vector<8x128xf32>
    %116 = math.exp %115 : vector<8x128xf32>
    %cst_40 = arith.constant 1.000000e+00 : f32
    %117 = vector.broadcast %cst_40 : f32 to vector<8x128xf32>
    %118 = arith.addf %117, %116 : vector<8x128xf32>
    %119 = arith.divf %117, %118 : vector<8x128xf32>
    %120 = vector.extract_strided_slice %113 {offsets = [0, 128], sizes = [8, 128], strides = [1, 1]} : vector<8x512xf32> to vector<8x128xf32>
    %121 = arith.negf %120 : vector<8x128xf32>
    %122 = math.exp %121 : vector<8x128xf32>
    %cst_41 = arith.constant 1.000000e+00 : f32
    %123 = vector.broadcast %cst_41 : f32 to vector<8x128xf32>
    %124 = arith.addf %123, %122 : vector<8x128xf32>
    %125 = arith.divf %123, %124 : vector<8x128xf32>
    %126 = vector.extract_strided_slice %113 {offsets = [0, 256], sizes = [8, 128], strides = [1, 1]} : vector<8x512xf32> to vector<8x128xf32>
    %127 = math.tanh %126 : vector<8x128xf32>
    %128 = vector.extract_strided_slice %113 {offsets = [0, 384], sizes = [8, 128], strides = [1, 1]} : vector<8x512xf32> to vector<8x128xf32>
    %129 = arith.negf %128 : vector<8x128xf32>
    %130 = math.exp %129 : vector<8x128xf32>
    %cst_42 = arith.constant 1.000000e+00 : f32
    %131 = vector.broadcast %cst_42 : f32 to vector<8x128xf32>
    %132 = arith.addf %131, %130 : vector<8x128xf32>
    %133 = arith.divf %131, %132 : vector<8x128xf32>
    %134 = arith.mulf %125, %104 : vector<8x128xf32>
    %135 = arith.mulf %119, %127 : vector<8x128xf32>
    %136 = arith.addf %134, %135 : vector<8x128xf32>
    %137 = math.tanh %136 : vector<8x128xf32>
    %138 = arith.mulf %133, %137 : vector<8x128xf32>
    %139 = arith.truncf %138 : vector<8x128xf32> to vector<8x128xbf16>
    %140 = vector.shape_cast %139 : vector<8x128xbf16> to vector<1x8x128xbf16>
    %c3 = arith.constant 3 : index
    %c0_43 = arith.constant 0 : index
    %c0_44 = arith.constant 0 : index
    %141 = vector.load %arg8[%c3, %c0_43, %c0_44] : memref<8x8x128xbf16, #tpu.memory_space<vmem>>, vector<1x8x128xbf16>
    tpu.vector_store %arg8[%c3, %c0_43, %c0_44], %140 {strides = array<i32>} : memref<8x8x128xbf16, #tpu.memory_space<vmem>>, vector<1x8x128xbf16>,
    %c32 = arith.constant 32 : index
    %c0_45 = arith.constant 0 : index
    %142 = vector.load %arg13[%c32, %c0_45] : memref<64x512xf32, #tpu.memory_space<vmem>>, vector<8x512xf32>
    %143 = arith.truncf %138 : vector<8x128xf32> to vector<8x128xbf16>
    %cst_46 = arith.constant dense<0.000000e+00> : vector<8x512xf32>
    %144 = tpu.matmul %143, %11, %cst_46 {dimension_numbers = #tpu.dot_dimension_numbers<[1], [0], [0], [1], [0, 0, 1, 1], [], []>} : vector<8x128xbf16>, vector<128x512xbf16>, vector<8x512xf32> -> vector<8x512xf32>
    %145 = arith.addf %142, %144 : vector<8x512xf32>
    %146 = vector.extract_strided_slice %145 {offsets = [0, 0], sizes = [8, 128], strides = [1, 1]} : vector<8x512xf32> to vector<8x128xf32>
    %147 = arith.negf %146 : vector<8x128xf32>
    %148 = math.exp %147 : vector<8x128xf32>
    %cst_47 = arith.constant 1.000000e+00 : f32
    %149 = vector.broadcast %cst_47 : f32 to vector<8x128xf32>
    %150 = arith.addf %149, %148 : vector<8x128xf32>
    %151 = arith.divf %149, %150 : vector<8x128xf32>
    %152 = vector.extract_strided_slice %145 {offsets = [0, 128], sizes = [8, 128], strides = [1, 1]} : vector<8x512xf32> to vector<8x128xf32>
    %153 = arith.negf %152 : vector<8x128xf32>
    %154 = math.exp %153 : vector<8x128xf32>
    %cst_48 = arith.constant 1.000000e+00 : f32
    %155 = vector.broadcast %cst_48 : f32 to vector<8x128xf32>
    %156 = arith.addf %155, %154 : vector<8x128xf32>
    %157 = arith.divf %155, %156 : vector<8x128xf32>
    %158 = vector.extract_strided_slice %145 {offsets = [0, 256], sizes = [8, 128], strides = [1, 1]} : vector<8x512xf32> to vector<8x128xf32>
    %159 = math.tanh %158 : vector<8x128xf32>
    %160 = vector.extract_strided_slice %145 {offsets = [0, 384], sizes = [8, 128], strides = [1, 1]} : vector<8x512xf32> to vector<8x128xf32>
    %161 = arith.negf %160 : vector<8x128xf32>
    %162 = math.exp %161 : vector<8x128xf32>
    %cst_49 = arith.constant 1.000000e+00 : f32
    %163 = vector.broadcast %cst_49 : f32 to vector<8x128xf32>
    %164 = arith.addf %163, %162 : vector<8x128xf32>
    %165 = arith.divf %163, %164 : vector<8x128xf32>
    %166 = arith.mulf %157, %136 : vector<8x128xf32>
    %167 = arith.mulf %151, %159 : vector<8x128xf32>
    %168 = arith.addf %166, %167 : vector<8x128xf32>
    %169 = math.tanh %168 : vector<8x128xf32>
    %170 = arith.mulf %165, %169 : vector<8x128xf32>
    %171 = arith.truncf %170 : vector<8x128xf32> to vector<8x128xbf16>
    %172 = vector.shape_cast %171 : vector<8x128xbf16> to vector<1x8x128xbf16>
    %c4 = arith.constant 4 : index
    %c0_50 = arith.constant 0 : index
    %c0_51 = arith.constant 0 : index
    %173 = vector.load %arg8[%c4, %c0_50, %c0_51] : memref<8x8x128xbf16, #tpu.memory_space<vmem>>, vector<1x8x128xbf16>
    tpu.vector_store %arg8[%c4, %c0_50, %c0_51], %172 {strides = array<i32>} : memref<8x8x128xbf16, #tpu.memory_space<vmem>>, vector<1x8x128xbf16>,
    %c40 = arith.constant 40 : index
    %c0_52 = arith.constant 0 : index
    %174 = vector.load %arg13[%c40, %c0_52] : memref<64x512xf32, #tpu.memory_space<vmem>>, vector<8x512xf32>
    %175 = arith.truncf %170 : vector<8x128xf32> to vector<8x128xbf16>
    %cst_53 = arith.constant dense<0.000000e+00> : vector<8x512xf32>
    %176 = tpu.matmul %175, %11, %cst_53 {dimension_numbers = #tpu.dot_dimension_numbers<[1], [0], [0], [1], [0, 0, 1, 1], [], []>} : vector<8x128xbf16>, vector<128x512xbf16>, vector<8x512xf32> -> vector<8x512xf32>
    %177 = arith.addf %174, %176 : vector<8x512xf32>
    %178 = vector.extract_strided_slice %177 {offsets = [0, 0], sizes = [8, 128], strides = [1, 1]} : vector<8x512xf32> to vector<8x128xf32>
    %179 = arith.negf %178 : vector<8x128xf32>
    %180 = math.exp %179 : vector<8x128xf32>
    %cst_54 = arith.constant 1.000000e+00 : f32
    %181 = vector.broadcast %cst_54 : f32 to vector<8x128xf32>
    %182 = arith.addf %181, %180 : vector<8x128xf32>
    %183 = arith.divf %181, %182 : vector<8x128xf32>
    %184 = vector.extract_strided_slice %177 {offsets = [0, 128], sizes = [8, 128], strides = [1, 1]} : vector<8x512xf32> to vector<8x128xf32>
    %185 = arith.negf %184 : vector<8x128xf32>
    %186 = math.exp %185 : vector<8x128xf32>
    %cst_55 = arith.constant 1.000000e+00 : f32
    %187 = vector.broadcast %cst_55 : f32 to vector<8x128xf32>
    %188 = arith.addf %187, %186 : vector<8x128xf32>
    %189 = arith.divf %187, %188 : vector<8x128xf32>
    %190 = vector.extract_strided_slice %177 {offsets = [0, 256], sizes = [8, 128], strides = [1, 1]} : vector<8x512xf32> to vector<8x128xf32>
    %191 = math.tanh %190 : vector<8x128xf32>
    %192 = vector.extract_strided_slice %177 {offsets = [0, 384], sizes = [8, 128], strides = [1, 1]} : vector<8x512xf32> to vector<8x128xf32>
    %193 = arith.negf %192 : vector<8x128xf32>
    %194 = math.exp %193 : vector<8x128xf32>
    %cst_56 = arith.constant 1.000000e+00 : f32
    %195 = vector.broadcast %cst_56 : f32 to vector<8x128xf32>
    %196 = arith.addf %195, %194 : vector<8x128xf32>
    %197 = arith.divf %195, %196 : vector<8x128xf32>
    %198 = arith.mulf %189, %168 : vector<8x128xf32>
    %199 = arith.mulf %183, %191 : vector<8x128xf32>
    %200 = arith.addf %198, %199 : vector<8x128xf32>
    %201 = math.tanh %200 : vector<8x128xf32>
    %202 = arith.mulf %197, %201 : vector<8x128xf32>
    %203 = arith.truncf %202 : vector<8x128xf32> to vector<8x128xbf16>
    %204 = vector.shape_cast %203 : vector<8x128xbf16> to vector<1x8x128xbf16>
    %c5 = arith.constant 5 : index
    %c0_57 = arith.constant 0 : index
    %c0_58 = arith.constant 0 : index
    %205 = vector.load %arg8[%c5, %c0_57, %c0_58] : memref<8x8x128xbf16, #tpu.memory_space<vmem>>, vector<1x8x128xbf16>
    tpu.vector_store %arg8[%c5, %c0_57, %c0_58], %204 {strides = array<i32>} : memref<8x8x128xbf16, #tpu.memory_space<vmem>>, vector<1x8x128xbf16>,
    %c48 = arith.constant 48 : index
    %c0_59 = arith.constant 0 : index
    %206 = vector.load %arg13[%c48, %c0_59] : memref<64x512xf32, #tpu.memory_space<vmem>>, vector<8x512xf32>
    %207 = arith.truncf %202 : vector<8x128xf32> to vector<8x128xbf16>
    %cst_60 = arith.constant dense<0.000000e+00> : vector<8x512xf32>
    %208 = tpu.matmul %207, %11, %cst_60 {dimension_numbers = #tpu.dot_dimension_numbers<[1], [0], [0], [1], [0, 0, 1, 1], [], []>} : vector<8x128xbf16>, vector<128x512xbf16>, vector<8x512xf32> -> vector<8x512xf32>
    %209 = arith.addf %206, %208 : vector<8x512xf32>
    %210 = vector.extract_strided_slice %209 {offsets = [0, 0], sizes = [8, 128], strides = [1, 1]} : vector<8x512xf32> to vector<8x128xf32>
    %211 = arith.negf %210 : vector<8x128xf32>
    %212 = math.exp %211 : vector<8x128xf32>
    %cst_61 = arith.constant 1.000000e+00 : f32
    %213 = vector.broadcast %cst_61 : f32 to vector<8x128xf32>
    %214 = arith.addf %213, %212 : vector<8x128xf32>
    %215 = arith.divf %213, %214 : vector<8x128xf32>
    %216 = vector.extract_strided_slice %209 {offsets = [0, 128], sizes = [8, 128], strides = [1, 1]} : vector<8x512xf32> to vector<8x128xf32>
    %217 = arith.negf %216 : vector<8x128xf32>
    %218 = math.exp %217 : vector<8x128xf32>
    %cst_62 = arith.constant 1.000000e+00 : f32
    %219 = vector.broadcast %cst_62 : f32 to vector<8x128xf32>
    %220 = arith.addf %219, %218 : vector<8x128xf32>
    %221 = arith.divf %219, %220 : vector<8x128xf32>
    %222 = vector.extract_strided_slice %209 {offsets = [0, 256], sizes = [8, 128], strides = [1, 1]} : vector<8x512xf32> to vector<8x128xf32>
    %223 = math.tanh %222 : vector<8x128xf32>
    %224 = vector.extract_strided_slice %209 {offsets = [0, 384], sizes = [8, 128], strides = [1, 1]} : vector<8x512xf32> to vector<8x128xf32>
    %225 = arith.negf %224 : vector<8x128xf32>
    %226 = math.exp %225 : vector<8x128xf32>
    %cst_63 = arith.constant 1.000000e+00 : f32
    %227 = vector.broadcast %cst_63 : f32 to vector<8x128xf32>
    %228 = arith.addf %227, %226 : vector<8x128xf32>
    %229 = arith.divf %227, %228 : vector<8x128xf32>
    %230 = arith.mulf %221, %200 : vector<8x128xf32>
    %231 = arith.mulf %215, %223 : vector<8x128xf32>
    %232 = arith.addf %230, %231 : vector<8x128xf32>
    %233 = math.tanh %232 : vector<8x128xf32>
    %234 = arith.mulf %229, %233 : vector<8x128xf32>
    %235 = arith.truncf %234 : vector<8x128xf32> to vector<8x128xbf16>
    %236 = vector.shape_cast %235 : vector<8x128xbf16> to vector<1x8x128xbf16>
    %c6 = arith.constant 6 : index
    %c0_64 = arith.constant 0 : index
    %c0_65 = arith.constant 0 : index
    %237 = vector.load %arg8[%c6, %c0_64, %c0_65] : memref<8x8x128xbf16, #tpu.memory_space<vmem>>, vector<1x8x128xbf16>
    tpu.vector_store %arg8[%c6, %c0_64, %c0_65], %236 {strides = array<i32>} : memref<8x8x128xbf16, #tpu.memory_space<vmem>>, vector<1x8x128xbf16>,
    %c56 = arith.constant 56 : index
    %c0_66 = arith.constant 0 : index
    %238 = vector.load %arg13[%c56, %c0_66] : memref<64x512xf32, #tpu.memory_space<vmem>>, vector<8x512xf32>
    %239 = arith.truncf %234 : vector<8x128xf32> to vector<8x128xbf16>
    %cst_67 = arith.constant dense<0.000000e+00> : vector<8x512xf32>
    %240 = tpu.matmul %239, %11, %cst_67 {dimension_numbers = #tpu.dot_dimension_numbers<[1], [0], [0], [1], [0, 0, 1, 1], [], []>} : vector<8x128xbf16>, vector<128x512xbf16>, vector<8x512xf32> -> vector<8x512xf32>
    %241 = arith.addf %238, %240 : vector<8x512xf32>
    %242 = vector.extract_strided_slice %241 {offsets = [0, 0], sizes = [8, 128], strides = [1, 1]} : vector<8x512xf32> to vector<8x128xf32>
    %243 = arith.negf %242 : vector<8x128xf32>
    %244 = math.exp %243 : vector<8x128xf32>
    %cst_68 = arith.constant 1.000000e+00 : f32
    %245 = vector.broadcast %cst_68 : f32 to vector<8x128xf32>
    %246 = arith.addf %245, %244 : vector<8x128xf32>
    %247 = arith.divf %245, %246 : vector<8x128xf32>
    %248 = vector.extract_strided_slice %241 {offsets = [0, 128], sizes = [8, 128], strides = [1, 1]} : vector<8x512xf32> to vector<8x128xf32>
    %249 = arith.negf %248 : vector<8x128xf32>
    %250 = math.exp %249 : vector<8x128xf32>
    %cst_69 = arith.constant 1.000000e+00 : f32
    %251 = vector.broadcast %cst_69 : f32 to vector<8x128xf32>
    %252 = arith.addf %251, %250 : vector<8x128xf32>
    %253 = arith.divf %251, %252 : vector<8x128xf32>
    %254 = vector.extract_strided_slice %241 {offsets = [0, 256], sizes = [8, 128], strides = [1, 1]} : vector<8x512xf32> to vector<8x128xf32>
    %255 = math.tanh %254 : vector<8x128xf32>
    %256 = vector.extract_strided_slice %241 {offsets = [0, 384], sizes = [8, 128], strides = [1, 1]} : vector<8x512xf32> to vector<8x128xf32>
    %257 = arith.negf %256 : vector<8x128xf32>
    %258 = math.exp %257 : vector<8x128xf32>
    %cst_70 = arith.constant 1.000000e+00 : f32
    %259 = vector.broadcast %cst_70 : f32 to vector<8x128xf32>
    %260 = arith.addf %259, %258 : vector<8x128xf32>
    %261 = arith.divf %259, %260 : vector<8x128xf32>
    %262 = arith.mulf %253, %232 : vector<8x128xf32>
    %263 = arith.mulf %247, %255 : vector<8x128xf32>
    %264 = arith.addf %262, %263 : vector<8x128xf32>
    %265 = math.tanh %264 : vector<8x128xf32>
    %266 = arith.mulf %261, %265 : vector<8x128xf32>
    %267 = arith.truncf %266 : vector<8x128xf32> to vector<8x128xbf16>
    %268 = vector.shape_cast %267 : vector<8x128xbf16> to vector<1x8x128xbf16>
    %c7 = arith.constant 7 : index
    %c0_71 = arith.constant 0 : index
    %c0_72 = arith.constant 0 : index
    %269 = vector.load %arg8[%c7, %c0_71, %c0_72] : memref<8x8x128xbf16, #tpu.memory_space<vmem>>, vector<1x8x128xbf16>
    tpu.vector_store %arg8[%c7, %c0_71, %c0_72], %268 {strides = array<i32>} : memref<8x8x128xbf16, #tpu.memory_space<vmem>>, vector<1x8x128xbf16>,
    %c0_73 = arith.constant 0 : index
    %c0_74 = arith.constant 0 : index
    %270 = vector.load %arg11[%c0_73, %c0_74] : memref<8x128xf32, #tpu.memory_space<vmem>>, vector<8x128xf32>
    tpu.vector_store %arg11[%c0_73, %c0_74], %266 {strides = array<i32>} : memref<8x128xf32, #tpu.memory_space<vmem>>, vector<8x128xf32>,
    %c0_75 = arith.constant 0 : index
    %c0_76 = arith.constant 0 : index
    %271 = vector.load %arg12[%c0_75, %c0_76] : memref<8x128xf32, #tpu.memory_space<vmem>>, vector<8x128xf32>
    tpu.vector_store %arg12[%c0_75, %c0_76], %264 {strides = array<i32>} : memref<8x128xf32, #tpu.memory_space<vmem>>, vector<8x128xf32>,
    %c0_77 = arith.constant 0 : index
    %c0_78 = arith.constant 0 : index
    %272 = vector.load %arg9[%c0_77, %c0_78] : memref<8x128xf32, #tpu.memory_space<vmem>>, vector<8x128xf32>
    tpu.vector_store %arg9[%c0_77, %c0_78], %266 {strides = array<i32>} : memref<8x128xf32, #tpu.memory_space<vmem>>, vector<8x128xf32>,
    %c0_79 = arith.constant 0 : index
    %c0_80 = arith.constant 0 : index
    %273 = vector.load %arg10[%c0_79, %c0_80] : memref<8x128xf32, #tpu.memory_space<vmem>>, vector<8x128xf32>
    tpu.vector_store %arg10[%c0_79, %c0_80], %264 {strides = array<i32>} : memref<8x128xf32, #tpu.memory_space<vmem>>, vector<8x128xf32>,
    return
  }
  func.func @transform_0(%arg0: i32, %arg1: i32) -> (i32, i32, i32) {
    %c0_i32 = arith.constant 0 : i32
    %c0_i32_0 = arith.constant 0 : i32
    return %arg1, %arg0, %c0_i32 : i32, i32, i32
  }
  func.func @transform_1(%arg0: i32, %arg1: i32) -> (i32, i32) {
    %c0_i32 = arith.constant 0 : i32
    %c0_i32_0 = arith.constant 0 : i32
    return %arg0, %c0_i32 : i32, i32
  }
  func.func @transform_2(%arg0: i32, %arg1: i32) -> (i32, i32) {
    %c0_i32 = arith.constant 0 : i32
    %c0_i32_0 = arith.constant 0 : i32
    return %arg0, %c0_i32 : i32, i32
  }
  func.func @transform_3(%arg0: i32, %arg1: i32) -> (i32, i32) {
    %c0_i32 = arith.constant 0 : i32
    %c0_i32_0 = arith.constant 0 : i32
    %c0_i32_1 = arith.constant 0 : i32
    return %c0_i32, %c0_i32_0 : i32, i32
  }
  func.func @transform_6(%arg0: i32, %arg1: i32) -> (i32, i32, i32) {
    %c0_i32 = arith.constant 0 : i32
    %c0_i32_0 = arith.constant 0 : i32
    return %arg1, %arg0, %c0_i32 : i32, i32, i32
  }
  func.func @transform_7(%arg0: i32, %arg1: i32) -> (i32, i32) {
    %c0_i32 = arith.constant 0 : i32
    %c0_i32_0 = arith.constant 0 : i32
    return %arg0, %c0_i32 : i32, i32
  }
  func.func @transform_8(%arg0: i32, %arg1: i32) -> (i32, i32) {
    %c0_i32 = arith.constant 0 : i32
    %c0_i32_0 = arith.constant 0 : i32
    return %arg0, %c0_i32 : i32, i32
  }
}

</mosaic_0001>

<bundles_post_ra>
// kernel: tpu_custom_call.1
= control target key start
LH: loop header
LB: loop body
LE: loop exit
PB: predicated region body
PF: predicated region fallthrough
CT: control target
= control target key end

     0   :  { %14 = vsyncpa [#allocation9], 0  ;;  %s2866_s0 = inlined_call_operand.hbm [shape: bf16[8,8,128], index: 0, kind: input, shape index: {}]   ;;  %s2867_s1 = inlined_call_operand.hbm [shape: f32[8,128], index: 1, kind: input, shape index: {}]   ;;  %s2868_s2 = inlined_call_operand.hbm [shape: f32[8,128], index: 2, kind: input, shape index: {}]   ;;  %s2869_s3 = inlined_call_operand.vmem [shape: f32[1,512], index: 3, kind: input, shape index: {}]   ;;  %s2870_s4 = inlined_call_operand.hbm [shape: bf16[128,512], index: 4, kind: input, shape index: {}]   ;;  %s2871_s5 = inlined_call_operand.hbm [shape: bf16[128,512], index: 5, kind: input, shape index: {}]   ;;  %s2872_s6 = inlined_call_operand.hbm [shape: bf16[8,8,128], index: 6, kind: output, shape index: {0}]   ;;  %s2873_s7 = inlined_call_operand.hbm [shape: f32[8,128], index: 7, kind: output, shape index: {1}]   ;;  %s2874_s8 = inlined_call_operand.hbm [shape: f32[8,128], index: 8, kind: output, shape index: {2}]  }
   0x1   :  { %15 = vsyncpa [#allocation12], 0 }
   0x2   :  { %16 = vsyncpa [#allocation10], 0 }
   0x3   :  { %17 = vsyncpa [#allocation16], 0  ;;  %s2252_s27 = smov [#allocation11]   ;;  %s2253_s29 = smov [#allocation8]  }
   0x4   :  { %s36_s28 = sshll.u32 %s2252_s27, 4  ;;  %s23_s30 = sshll.u32 %s2253_s29, 4  ;;  %s37_s28 = int_to_ptr.vmem [resolvable:$true] %s36_s28  ;;  %s24_s30 = int_to_ptr.vmem [resolvable:$true] %s23_s30 }
   0x5   :  { %s2088_s9 = scalar_lea.vmem %s37_s28, 128  ;;  %p2093_p1 = scmp.lt.s32.totalorder %s37_s28, %s37_s28 }
   0x6   :  { %p2089_p0 = scmp.ne.s32.totalorder %s37_s28, %s2088_s9  ;;  %p2094_p2 = scmp.lt.s32.totalorder %s2088_s9, %s2088_s9 }
   0x8   :  { %p2095_p3 = por %p2094_p2, %p2093_p1 }
   0xa   :  { %p2096_p4 = pnand %p2095_p3, %p2089_p0 }
   0xc   :  { %2099 = shalt.err (!%p2096_p4)
}
   0xd   :  { %39 = dma.hbm_to_vmem [thread:$0]  %s2867_s1, 128, %s37_s28, [#allocation12]  }
   0xe   :  { %s2108_s12 = scalar_lea.vmem %s24_s30, 512  ;;  %p2113_p6 = scmp.lt.s32.totalorder %s24_s30, %s24_s30 }
   0xf   :  { %p2109_p5 = scmp.ne.s32.totalorder %s24_s30, %s2108_s12  ;;  %p2114_p7 = scmp.lt.s32.totalorder %s2108_s12, %s2108_s12 }
  0x11   :  { %p2115_p8 = por %p2114_p7, %p2113_p6 }
  0x13   :  { %p2116_p9 = pnand %p2115_p8, %p2109_p5 }
  0x15   :  { %2119 = shalt.err (!%p2116_p9)
}
  0x16   :  { %s2254_s13 = smov 64   ;;  %s2255_s14 = smov 4  }
  0x17   :  { %29 = dma.hbm_to_vmem [thread:$0]  %s2866_s0, 512, %s24_s30, [#allocation9], %s2254_s13, %s2254_s13, %s2255_s14  }
  0x18   :  { %s2256_s17 = smov [#allocation13]  }
  0x19   :  { %s46_s18 = sshll.u32 %s2256_s17, 4  ;;  %s47_s18 = int_to_ptr.vmem [resolvable:$true] %s46_s18 }
  0x1a   :  { %s2128_s1 = scalar_lea.vmem %s47_s18, 128  ;;  %p2133_p11 = scmp.lt.s32.totalorder %s47_s18, %s47_s18 }
  0x1b   :  { %p2129_p10 = scmp.ne.s32.totalorder %s47_s18, %s2128_s1  ;;  %p2134_p12 = scmp.lt.s32.totalorder %s2128_s1, %s2128_s1 }
  0x1d   :  { %p2135_p13 = por %p2134_p12, %p2133_p11 }
  0x1f   :  { %p2136_p0 = pnand %p2135_p13, %p2129_p10 }
  0x21   :  { %2139 = shalt.err (!%p2136_p0)
}
  0x22   :  { %49 = dma.hbm_to_vmem [thread:$0]  %s2868_s2, 128, %s47_s18, [#allocation12]  }
  0x23   :  { %2240 = dma.done.wait [#allocation9], 512  }
  0x24   :  { %2241 = vsyncadd [#allocation9], 4294966784 }
  0x25   :  { %2242 = dma.done.wait [#allocation12], 256  }
  0x26   :  { %2243 = vsyncadd [#allocation12], 4294967040  ;;  %s2257_s21 = smov [#allocation5]   ;;  %s2258_s22 = smov [#allocation6]  }
  0x27   :  { %s77_s0 = sshll.u32 %s2257_s21, 4  ;;  %s89_s23 = sshll.u32 %s2258_s22, 4  ;;  %s78_s0 = int_to_ptr.vmem [resolvable:$true] %s77_s0  ;;  %s90_s23 = int_to_ptr.vmem [resolvable:$true] %s89_s23 }
  0x28   :  { %s2148_s24 = scalar_lea.vmem %s78_s0, 4096  ;;  %p2153_p2 = scmp.lt.s32.totalorder %s78_s0, %s78_s0 }
  0x29   :  { %p2149_p1 = scmp.ne.s32.totalorder %s78_s0, %s2148_s24  ;;  %p2154_p3 = scmp.lt.s32.totalorder %s2148_s24, %s2148_s24 }
  0x2b   :  { %p2155_p4 = por %p2154_p3, %p2153_p2 }
  0x2d   :  { %p2156_p5 = pnand %p2155_p4, %p2149_p1 }
  0x2f   :  { %2159 = shalt.err (!%p2156_p5)  }
  0x30   :  { %80 = dma.hbm_to_vmem [thread:$0]  %s2870_s4, 4096, %s78_s0, [#allocation7] }
  0x31   :  { %s2168_s2 = scalar_lea.vmem %s90_s23, 4096  ;;  %p2173_p7 = scmp.lt.s32.totalorder %s90_s23, %s90_s23 }
  0x32   :  { %p2169_p6 = scmp.ne.s32.totalorder %s90_s23, %s2168_s2  ;;  %p2174_p8 = scmp.lt.s32.totalorder %s2168_s2, %s2168_s2 }
  0x34   :  { %p2175_p9 = por %p2174_p8, %p2173_p7 }
  0x36   :  { %p2176_p10 = pnand %p2175_p9, %p2169_p6 }
  0x38   :  { %2179 = shalt.err (!%p2176_p10)  }
  0x39   :  { %92 = dma.hbm_to_vmem [thread:$0]  %s2871_s5, 4096, %s90_s23, [#allocation7 + $0x1]  ;;  %v2326_v0 = vld [vmem:[#allocation11] sm:$0xff]  ;;  %v2328_v1 = vld [vmem:[#allocation13] sm:$0xff] }
  0x3a   :  { %2244 = dma.done.wait [#allocation7], 4096 }
  0x3b   :  { %2245 = vsyncadd [#allocation7], 4294963200 }
  0x3c   :  { %2246 = dma.done.wait [#allocation7 + $0x1], 4096 }
  0x3d   :  { %2247 = vsyncadd [#allocation7 + $0x1], 4294963200  ;;  %v2875_v2 = vmov 0   ;;  %v1820_v3 = vld [vmem:[#allocation5 + $0xe4] ss:$16 sps:$4 sm:$0xff]   ;;  %v1881_v46 = vld [vmem:[#allocation8 + $0x8] sm:$0xff]  }
  0x3e   :  { %377 = vmatprep.mubr.bf16.mxu0 %v2875_v2  ;;  %450 = vmatprep.mubr.bf16.mxu1 %v2875_v2  ;;  %v1822_v4 = vld [vmem:[#allocation5 + $0xec] ss:$16 sps:$4 sm:$0xff]   ;;  %v1824_v5 = vld [vmem:[#allocation5 + $0xe0] ss:$16 sps:$4 sm:$0xff]   ;;  %v1825_v6 = vld [vmem:[#allocation5 + $0xe8] ss:$16 sps:$4 sm:$0xff]  }
  0x3f   :  { %345 = vmatprep.subr.bf16.mxu0 %v1820_v3  ;;  %418 = vmatprep.subr.bf16.mxu1 %v1822_v4  ;;  %v1826_v7 = vld [vmem:[#allocation5 + $0xc4] ss:$16 sps:$4 sm:$0xff]   ;;  %v1828_v8 = vld [vmem:[#allocation5 + $0xcc] ss:$16 sps:$4 sm:$0xff]   ;;  %v1830_v9 = vld [vmem:[#allocation5 + $0xc0] ss:$16 sps:$4 sm:$0xff]  }
  0x40   :  { %346 = vmatpush1.bf16.msra.mxu0 %v1824_v5  ;;  %419 = vmatpush1.bf16.msra.mxu1 %v1825_v6  ;;  %v1831_v10 = vld [vmem:[#allocation5 + $0xc8] ss:$16 sps:$4 sm:$0xff]   ;;  %v1832_v11 = vld [vmem:[#allocation5 + $0xa4] ss:$16 sps:$4 sm:$0xff]   ;;  %v1834_v12 = vld [vmem:[#allocation5 + $0xac] ss:$16 sps:$4 sm:$0xff]  }
  0x41   :  { %347 = vmatprep.subr.bf16.mxu0 %v1826_v7  ;;  %420 = vmatprep.subr.bf16.mxu1 %v1828_v8  ;;  %v1836_v13 = vld [vmem:[#allocation5 + $0xa0] ss:$16 sps:$4 sm:$0xff]   ;;  %v1837_v14 = vld [vmem:[#allocation5 + $0xa8] ss:$16 sps:$4 sm:$0xff]   ;;  %v1838_v15 = vld [vmem:[#allocation5 + $0x84] ss:$16 sps:$4 sm:$0xff]  }
  0x42   :  { %v1840_v16 = vld [vmem:[#allocation5 + $0x8c] ss:$16 sps:$4 sm:$0xff]   ;;  %v1842_v17 = vld [vmem:[#allocation5 + $0x80] ss:$16 sps:$4 sm:$0xff]   ;;  %v1843_v18 = vld [vmem:[#allocation5 + $0x88] ss:$16 sps:$4 sm:$0xff]  }
  0x43   :  { %v1844_v19 = vld [vmem:[#allocation5 + $0x64] ss:$16 sps:$4 sm:$0xff]   ;;  %v1846_v20 = vld [vmem:[#allocation5 + $0x6c] ss:$16 sps:$4 sm:$0xff]   ;;  %v1848_v21 = vld [vmem:[#allocation5 + $0x60] ss:$16 sps:$4 sm:$0xff]  }
  0x44   :  { %348 = vmatpush1.bf16.msra.mxu0 %v1830_v9  ;;  %421 = vmatpush1.bf16.msra.mxu1 %v1831_v10  ;;  %v1849_v22 = vld [vmem:[#allocation5 + $0x68] ss:$16 sps:$4 sm:$0xff]   ;;  %v1850_v23 = vld [vmem:[#allocation5 + $0x44] ss:$16 sps:$4 sm:$0xff]   ;;  %v1852_v24 = vld [vmem:[#allocation5 + $0x4c] ss:$16 sps:$4 sm:$0xff]   ;;  %v561_v10 = vpack.c.bf16 %v2326_v0, %v2326_v0  ;;  %v141_v0 = vlaneseq }
  0x45   :  { %349 = vmatprep.subr.bf16.mxu0 %v1832_v11  ;;  %422 = vmatprep.subr.bf16.mxu1 %v1834_v12  ;;  %v1854_v25 = vld [vmem:[#allocation5 + $0x40] ss:$16 sps:$4 sm:$0xff]   ;;  %v1855_v26 = vld [vmem:[#allocation5 + $0x48] ss:$16 sps:$4 sm:$0xff]   ;;  %v1856_v27 = vld [vmem:[#allocation5 + $0x24] ss:$16 sps:$4 sm:$0xff]  }
  0x46   :  { %v1858_v28 = vld [vmem:[#allocation5 + $0x2c] ss:$16 sps:$4 sm:$0xff]   ;;  %v1860_v29 = vld [vmem:[#allocation5 + $0x20] ss:$16 sps:$4 sm:$0xff]   ;;  %v1861_v30 = vld [vmem:[#allocation5 + $0x28] ss:$16 sps:$4 sm:$0xff]  }
  0x47   :  { %v1862_v31 = vld [vmem:[#allocation5 + $0x4] ss:$16 sps:$4 sm:$0xff]   ;;  %v1864_v32 = vld [vmem:[#allocation5 + $0xc] ss:$16 sps:$4 sm:$0xff]   ;;  %v1866_v33 = vld [vmem:[#allocation5] ss:$16 sps:$4 sm:$0xff]  }
  0x48   :  { %350 = vmatpush1.bf16.msra.mxu0 %v1836_v13  ;;  %423 = vmatpush1.bf16.msra.mxu1 %v1837_v14  ;;  %v1867_v34 = vld [vmem:[#allocation5 + $0x8] ss:$16 sps:$4 sm:$0xff]   ;;  %v2332_v35 = vld [vmem:[#allocation6 + $0xe4] ss:$16 sps:$4 sm:$0xff]   ;;  %v2334_v36 = vld [vmem:[#allocation6 + $0xec] ss:$16 sps:$4 sm:$0xff]  }
  0x49   :  { %351 = vmatprep.subr.bf16.mxu0 %v1838_v15  ;;  %424 = vmatprep.subr.bf16.mxu1 %v1840_v16  ;;  %v1868_v37 = vld [vmem:[#allocation8] sm:$0xff]   ;;  %v2338_v39 = vld [vmem:[#allocation6 + $0xe8] ss:$16 sps:$4 sm:$0xff]   ;;  %v2344_v41 = vld [vmem:[#allocation6 + $0xcc] ss:$16 sps:$4 sm:$0xff]   ;;  %v142_v11 = vshrl.u32 %v141_v0, 7 }
  0x4a   :  { %v2336_v38 = vld [vmem:[#allocation6 + $0xe0] ss:$16 sps:$4 sm:$0xff]   ;;  %v2342_v40 = vld [vmem:[#allocation6 + $0xc4] ss:$16 sps:$4 sm:$0xff]   ;;  %v2350_v43 = vld [vmem:[#allocation6 + $0xc8] ss:$16 sps:$4 sm:$0xff]  }
  0x4b   :  { %v2346_v42 = vld [vmem:[#allocation6 + $0xc0] ss:$16 sps:$4 sm:$0xff]   ;;  %v2354_v44 = vld [vmem:[#allocation6 + $0xa4] ss:$16 sps:$4 sm:$0xff]   ;;  %v2356_v45 = vld [vmem:[#allocation6 + $0xac] ss:$16 sps:$4 sm:$0xff]  }
  0x4c   :  { %352 = vmatpush1.bf16.msra.mxu0 %v1842_v17  ;;  %425 = vmatpush1.bf16.msra.mxu1 %v1843_v18  ;;  %v2360_v47 = vld [vmem:[#allocation6 + $0xa0] ss:$16 sps:$4 sm:$0xff]   ;;  %v2362_v48 = vld [vmem:[#allocation6 + $0xa8] ss:$16 sps:$4 sm:$0xff]   ;;  %v2366_v49 = vld [vmem:[#allocation6 + $0x84] ss:$16 sps:$4 sm:$0xff]  }
  0x4d   :  { %353 = vmatprep.subr.bf16.mxu0 %v1844_v19  ;;  %426 = vmatprep.subr.bf16.mxu1 %v1846_v20  ;;  %v2370_v50 = vld [vmem:[#allocation6 + $0x8c] ss:$16 sps:$4 sm:$0xff]   ;;  %v2372_v51 = vld [vmem:[#allocation6 + $0x80] ss:$16 sps:$4 sm:$0xff]   ;;  %v2374_v52 = vld [vmem:[#allocation6 + $0x88] ss:$16 sps:$4 sm:$0xff]  }
  0x4e   :  { %v2378_v53 = vld [vmem:[#allocation6 + $0x64] ss:$16 sps:$4 sm:$0xff]   ;;  %v2382_v54 = vld [vmem:[#allocation6 + $0x6c] ss:$16 sps:$4 sm:$0xff]   ;;  %v2388_v56 = vld [vmem:[#allocation6 + $0x60] ss:$16 sps:$4 sm:$0xff]  }
  0x4f   :  { %v1894_v55 = vld [vmem:[#allocation8 + $0x10] sm:$0xff]   ;;  %v2390_v57 = vld [vmem:[#allocation6 + $0x68] ss:$16 sps:$4 sm:$0xff]   ;;  %v2396_v59 = vld [vmem:[#allocation6 + $0x4c] ss:$16 sps:$4 sm:$0xff]   ;;  %v151_v12 = vsub.s32 2, %v142_v11 }
  0x50   :  { %354 = vmatpush1.bf16.msra.mxu0 %v1848_v21  ;;  %427 = vmatpush1.bf16.msra.mxu1 %v1849_v22  ;;  %v2394_v58 = vld [vmem:[#allocation6 + $0x44] ss:$16 sps:$4 sm:$0xff]   ;;  %v2400_v60 = vld [vmem:[#allocation6 + $0x40] ss:$16 sps:$4 sm:$0xff]   ;;  %v2402_v61 = vld [vmem:[#allocation6 + $0x48] ss:$16 sps:$4 sm:$0xff]  }
  0x51   :  { %355 = vmatprep.subr.bf16.mxu0 %v1850_v23  ;;  %428 = vmatprep.subr.bf16.mxu1 %v1852_v24  ;;  %v2406_v62 = vld [vmem:[#allocation6 + $0x24] ss:$16 sps:$4 sm:$0xff]   ;;  %v2408_v63 = vld [vmem:[#allocation6 + $0x2c] ss:$16 sps:$4 sm:$0xff]   ;;  %v2414_v4 = vld [vmem:[#allocation6 + $0x20] ss:$16 sps:$4 sm:$0xff]  }
  0x52   :  { %v1907_v3 = vld [vmem:[#allocation8 + $0x18] sm:$0xff]   ;;  %v2420_v6 = vld [vmem:[#allocation6 + $0x4] ss:$16 sps:$4 sm:$0xff]   ;;  %v2426_v8 = vld [vmem:[#allocation6] ss:$16 sps:$4 sm:$0xff]   ;;  %v143_v13 = vsub.s32 0, %v142_v11 }
  0x53   :  { %v2416_v5 = vld [vmem:[#allocation6 + $0x28] ss:$16 sps:$4 sm:$0xff]   ;;  %v2422_v7 = vld [vmem:[#allocation6 + $0xc] ss:$16 sps:$4 sm:$0xff]   ;;  %v155_v14 = vsub.s32 3, %v142_v11  ;;  %v147_v19 = vsub.s32 1, %v142_v11 }
  0x54   :  { %356 = vmatpush1.bf16.msra.mxu0 %v1854_v25  ;;  %429 = vmatpush1.bf16.msra.mxu1 %v1855_v26  ;;  %v2428_v9 = vld [vmem:[#allocation6 + $0x8] ss:$16 sps:$4 sm:$0xff]   ;;  %v139_v15 = vld [vmem:[%s2869_s3] sm:$0xf]  ;;  %s2260_s3 = smov [#allocation15]   ;;  %s2261_s30 = smov [#allocation17]  }
  0x55   :  { %357 = vmatprep.subr.bf16.mxu0 %v1856_v27  ;;  %430 = vmatprep.subr.bf16.mxu1 %v1858_v28  ;;  %v2481_v18 = vrot.slane %v139_v15, %v151_v12  ;;  %v144_v22 = vrot.slane %v139_v15, %v143_v13  ;;  %v2487_v23 = vrot.slane %v139_v15, %v155_v14  ;;  %s1675_s29 = sshll.u32 %s2260_s3, 4  ;;  %s1685_s9 = sshll.u32 %s2261_s30, 4  ;;  %s1676_s29 = int_to_ptr.vmem [resolvable:$true] %s1675_s29  ;;  %s1686_s9 = int_to_ptr.vmem [resolvable:$true] %s1685_s9 }
  0x56   :  { %v148_v26 = vrot.slane %v139_v15, %v147_v19  ;;  %s2262_s10 = smov [#allocation14]   ;;  %s2180_s12 = scalar_lea.vmem %s1676_s29, 128 }
  0x57   :  { %s1662_s11 = sshll.u32 %s2262_s10, 4  ;;  %p2181_p11 = scmp.ne.s32.totalorder %s1676_s29, %s2180_s12  ;;  %s1663_s11 = int_to_ptr.vmem [resolvable:$true] %s1662_s11 }
  0x58   :  { %358 = vmatpush1.bf16.msra.mxu0 %v1860_v29  ;;  %431 = vmatpush1.bf16.msra.mxu1 %v1861_v30  ;;  %p2185_p12 = scmp.lt.s32.totalorder %s1676_s29, %s1676_s29  ;;  %p2186_p13 = scmp.lt.s32.totalorder %s2180_s12, %s2180_s12 }
  0x59   :  { %359 = vmatprep.subr.bf16.mxu0 %v1862_v31  ;;  %432 = vmatprep.subr.bf16.mxu1 %v1864_v32 }
  0x5a   :  { %p2187_p0 = por %p2186_p13, %p2185_p12 }
  0x5c   :  { %360 = vmatpush1.bf16.msra.mxu0 %v1866_v33  ;;  %433 = vmatpush1.bf16.msra.mxu1 %v1867_v34  ;;  %p2188_p1 = pnand %p2187_p0, %p2181_p11 }
  0x5d   :  { %722 = vmatprep.subr.bf16.mxu0 %v2332_v35  ;;  %763 = vmatprep.subr.bf16.mxu1 %v2334_v36 }
  0x5f   :  { %378 = vmatmul.mubr.bf16.vlgmr.msra.gmra.mxu0 %v1868_v37  ;;  %451 = vmatmul.mubr.bf16.vlgmr.msra.gmra.mxu1 %v1868_v37 }
  0x60   :  { %723 = vmatpush1.bf16.msra.mxu0 %v2336_v38  ;;  %764 = vmatpush1.bf16.msra.mxu1 %v2338_v39 }
  0x61   :  { %724 = vmatprep.subr.bf16.mxu0 %v2342_v40  ;;  %765 = vmatprep.subr.bf16.mxu1 %v2344_v41 }
  0x62   :  { %387 = vmatprep.mubr.bf16.mxu0 %v2875_v2  ;;  %460 = vmatprep.mubr.bf16.mxu1 %v2875_v2 }
  0x64   :  { %725 = vmatpush1.bf16.msra.mxu0 %v2346_v42  ;;  %766 = vmatpush1.bf16.msra.mxu1 %v2350_v43 }
  0x65   :  { %726 = vmatprep.subr.bf16.mxu0 %v2354_v44  ;;  %767 = vmatprep.subr.bf16.mxu1 %v2356_v45 }
  0x67   :  { %388 = vmatmul.mubr.bf16.gmra.mxu0 %v1881_v46  ;;  %461 = vmatmul.mubr.bf16.gmra.mxu1 %v1881_v46 }
  0x68   :  { %727 = vmatpush1.bf16.msra.mxu0 %v2360_v47  ;;  %768 = vmatpush1.bf16.msra.mxu1 %v2362_v48 }
  0x69   :  { %728 = vmatprep.subr.bf16.mxu0 %v2366_v49  ;;  %769 = vmatprep.subr.bf16.mxu1 %v2370_v50 }
  0x6a   :  { %397 = vmatprep.mubr.bf16.mxu0 %v2875_v2  ;;  %470 = vmatprep.mubr.bf16.mxu1 %v2875_v2 }
  0x6c   :  { %729 = vmatpush1.bf16.msra.mxu0 %v2372_v51  ;;  %770 = vmatpush1.bf16.msra.mxu1 %v2374_v52 }
  0x6d   :  { %730 = vmatprep.subr.bf16.mxu0 %v2378_v53  ;;  %771 = vmatprep.subr.bf16.mxu1 %v2382_v54 }
  0x6f   :  { %398 = vmatmul.mubr.bf16.gmra.mxu0 %v1894_v55  ;;  %471 = vmatmul.mubr.bf16.gmra.mxu1 %v1894_v55 }
  0x70   :  { %731 = vmatpush1.bf16.msra.mxu0 %v2388_v56  ;;  %772 = vmatpush1.bf16.msra.mxu1 %v2390_v57 }
  0x71   :  { %732 = vmatprep.subr.bf16.mxu0 %v2394_v58  ;;  %773 = vmatprep.subr.bf16.mxu1 %v2396_v59 }
  0x72   :  { %407 = vmatprep.mubr.bf16.mxu0 %v2875_v2  ;;  %480 = vmatprep.mubr.bf16.mxu1 %v2875_v2 }
  0x74   :  { %733 = vmatpush1.bf16.msra.mxu0 %v2400_v60  ;;  %774 = vmatpush1.bf16.msra.mxu1 %v2402_v61 }
  0x75   :  { %734 = vmatprep.subr.bf16.mxu0 %v2406_v62  ;;  %775 = vmatprep.subr.bf16.mxu1 %v2408_v63 }
  0x77   :  { %408 = vmatmul.mubr.bf16.gmra.mxu0 %v1907_v3  ;;  %481 = vmatmul.mubr.bf16.gmra.mxu1 %v1907_v3 }
  0x78   :  { %735 = vmatpush1.bf16.msra.mxu0 %v2414_v4  ;;  %776 = vmatpush1.bf16.msra.mxu1 %v2416_v5 }
  0x79   :  { %736 = vmatprep.subr.bf16.mxu0 %v2420_v6  ;;  %777 = vmatprep.subr.bf16.mxu1 %v2422_v7 }
  0x7a   :  { %754 = vmatprep.mubr.bf16.mxu0 %v2875_v2  ;;  %795 = vmatprep.mubr.bf16.mxu1 %v2875_v2 }
  0x7c   :  { %737 = vmatpush1.bf16.msra.mxu0 %v2426_v8  ;;  %778 = vmatpush1.bf16.msra.mxu1 %v2428_v9 }
  0x7d   :  { %838 = vmatprep.subr.bf16.mxu0 %v2332_v35  ;;  %879 = vmatprep.subr.bf16.mxu1 %v2334_v36 }
  0x7f   :  { %755 = vmatmul.mubr.bf16.vlgmr.msra.gmra.mxu0 %v561_v10  ;;  %796 = vmatmul.mubr.bf16.vlgmr.msra.gmra.mxu1 %v561_v10 }
  0x80   :  { %839 = vmatpush1.bf16.msra.mxu0 %v2336_v38  ;;  %880 = vmatpush1.bf16.msra.mxu1 %v2338_v39 }
  0x81   :  { %840 = vmatprep.subr.bf16.mxu0 %v2342_v40  ;;  %881 = vmatprep.subr.bf16.mxu1 %v2344_v41 }
  0x82   :  { %870 = vmatprep.mubr.bf16.mxu0 %v2875_v2  ;;  %911 = vmatprep.mubr.bf16.mxu1 %v2875_v2 }
  0x84   :  { %841 = vmatpush1.bf16.msra.mxu0 %v2346_v42  ;;  %882 = vmatpush1.bf16.msra.mxu1 %v2350_v43 }
  0x85   :  { %842 = vmatprep.subr.bf16.mxu0 %v2354_v44  ;;  %883 = vmatprep.subr.bf16.mxu1 %v2356_v45 }
  0x88   :  { %843 = vmatpush1.bf16.msra.mxu0 %v2360_v47  ;;  %884 = vmatpush1.bf16.msra.mxu1 %v2362_v48 }
  0x89   :  { %844 = vmatprep.subr.bf16.mxu0 %v2366_v49  ;;  %885 = vmatprep.subr.bf16.mxu1 %v2370_v50 }
  0x8c   :  { %845 = vmatpush1.bf16.msra.mxu0 %v2372_v51  ;;  %886 = vmatpush1.bf16.msra.mxu1 %v2374_v52 }
  0x8d   :  { %846 = vmatprep.subr.bf16.mxu0 %v2378_v53  ;;  %887 = vmatprep.subr.bf16.mxu1 %v2382_v54 }
  0x90   :  { %847 = vmatpush1.bf16.msra.mxu0 %v2388_v56  ;;  %888 = vmatpush1.bf16.msra.mxu1 %v2390_v57 }
  0x91   :  { %848 = vmatprep.subr.bf16.mxu0 %v2394_v58  ;;  %889 = vmatprep.subr.bf16.mxu1 %v2396_v59 }
  0x94   :  { %849 = vmatpush1.bf16.msra.mxu0 %v2400_v60  ;;  %890 = vmatpush1.bf16.msra.mxu1 %v2402_v61 }
  0x95   :  { %850 = vmatprep.subr.bf16.mxu0 %v2406_v62  ;;  %891 = vmatprep.subr.bf16.mxu1 %v2408_v63 }
  0x98   :  { %851 = vmatpush1.bf16.msra.mxu0 %v2414_v4  ;;  %892 = vmatpush1.bf16.msra.mxu1 %v2416_v5 }
  0x99   :  { %852 = vmatprep.subr.bf16.mxu0 %v2420_v6  ;;  %893 = vmatprep.subr.bf16.mxu1 %v2422_v7 }
  0x9c   :  { %853 = vmatpush1.bf16.msra.mxu0 %v2426_v8  ;;  %894 = vmatpush1.bf16.msra.mxu1 %v2428_v9 }
  0x9d   :  { %955 = vmatprep.subr.bf16.mxu0 %v2332_v35  ;;  %996 = vmatprep.subr.bf16.mxu1 %v2334_v36 }
 0x11f   :  { %v2477_v16 = vpop.f32.mrf.mxu0  ;;  %v2479_v17 = vpop.f32.mrf.mxu1 }
 0x121   :  { %v2483_v20 = vpop.f32.mrf.mxu0  ;;  %v2485_v21 = vpop.f32.mrf.mxu1 }
 0x123   :  { %v383_v24 = vpop.f32.mrf.mxu0  ;;  %v456_v25 = vpop.f32.mrf.mxu1 }
 0x124   :  { %v2489_v27 = vadd.f32 %v383_v24, %v144_v22  ;;  %v2492_v28 = vadd.f32 %v456_v25, %v2481_v18 }
 0x125   :  { %v385_v29 = vpop.f32.mrf.mxu0  ;;  %v458_v30 = vpop.f32.mrf.mxu1 }
 0x126   :  { %v2494_v31 = vadd.f32 %v385_v29, %v148_v26  ;;  %v2497_v32 = vadd.f32 %v458_v30, %v2487_v23 }
 0x127   :  { %v389_v33 = vpop.f32.mrf.mxu0  ;;  %v462_v34 = vpop.f32.mrf.mxu1 }
 0x128   :  { %v2499_v37 = vadd.f32 %v389_v33, %v144_v22  ;;  %v2502_v46 = vadd.f32 %v462_v34, %v2481_v18 }
 0x129   :  { %v391_v55 = vpop.f32.mrf.mxu0  ;;  %v464_v3 = vpop.f32.mrf.mxu1 }
 0x12a   :  { %2877 = vst [vmem:[#allocation30_spill] sm:$0xff] %v2502_v46  ;;  %v2504_v10 = vadd.f32 %v391_v55, %v148_v26  ;;  %v2507_v0 = vadd.f32 %v464_v3, %v2487_v23 }
 0x12b   :  { %v393_v11 = vpop.f32.mrf.mxu0  ;;  %v466_v12 = vpop.f32.mrf.mxu1 }
 0x12c   :  { %2878 = vst [vmem:[#allocation31_spill] sm:$0xff] %v2507_v0  ;;  %v2509_v13 = vadd.f32 %v393_v11, %v144_v22  ;;  %v2512_v14 = vadd.f32 %v466_v12, %v2481_v18 }
 0x12d   :  { %v395_v15 = vpop.f32.mrf.mxu0  ;;  %v468_v19 = vpop.f32.mrf.mxu1 }
 0x12e   :  { %2879 = vst [vmem:[#allocation32_spill] sm:$0xff] %v2509_v13  ;;  %2880 = vst [vmem:[#allocation33_spill] sm:$0xff] %v2512_v14  ;;  %v2514_v24 = vadd.f32 %v395_v15, %v148_v26  ;;  %v2517_v25 = vadd.f32 %v468_v19, %v2487_v23 }
 0x12f   :  { %v399_v29 = vpop.f32.mrf.mxu0  ;;  %v472_v30 = vpop.f32.mrf.mxu1 }
 0x130   :  { %2881 = vst [vmem:[#allocation34_spill] sm:$0xff] %v2514_v24  ;;  %2882 = vst [vmem:[#allocation35_spill] sm:$0xff] %v2517_v25  ;;  %v2519_v33 = vadd.f32 %v399_v29, %v144_v22  ;;  %v2522_v34 = vadd.f32 %v472_v30, %v2481_v18 }
 0x131   :  { %v401_v55 = vpop.f32.mrf.mxu0  ;;  %v474_v3 = vpop.f32.mrf.mxu1 }
 0x132   :  { %2883 = vst [vmem:[#allocation36_spill] sm:$0xff] %v2519_v33  ;;  %2884 = vst [vmem:[#allocation37_spill] sm:$0xff] %v2522_v34  ;;  %v2524_v11 = vadd.f32 %v401_v55, %v148_v26  ;;  %v2527_v12 = vadd.f32 %v474_v3, %v2487_v23 }
 0x133   :  { %v403_v2 = vpop.f32.mrf.mxu0  ;;  %v476_v15 = vpop.f32.mrf.mxu1 }
 0x134   :  { %2885 = vst [vmem:[#allocation38_spill] sm:$0xff] %v2524_v11  ;;  %2886 = vst [vmem:[#allocation39_spill] sm:$0xff] %v2527_v12  ;;  %v2529_v14 = vadd.f32 %v403_v2, %v144_v22  ;;  %v2532_v19 = vadd.f32 %v476_v15, %v2481_v18 }
 0x135   :  { %v405_v25 = vpop.f32.mrf.mxu0  ;;  %v478_v29 = vpop.f32.mrf.mxu1 }
 0x136   :  { %2887 = vst [vmem:[#allocation40_spill] sm:$0xff] %v2529_v14  ;;  %2888 = vst [vmem:[#allocation41_spill] sm:$0xff] %v2532_v19  ;;  %v2534_v33 = vadd.f32 %v405_v25, %v148_v26  ;;  %v2537_v30 = vadd.f32 %v478_v29, %v2487_v23 }
 0x137   :  { %v409_v34 = vpop.f32.mrf.mxu0  ;;  %v482_v55 = vpop.f32.mrf.mxu1 }
 0x138   :  { %2889 = vst [vmem:[#allocation42_spill] sm:$0xff] %v2534_v33  ;;  %2890 = vst [vmem:[#allocation43_spill] sm:$0xff] %v2537_v30  ;;  %v2539_v11 = vadd.f32 %v409_v34, %v144_v22  ;;  %v2542_v3 = vadd.f32 %v482_v55, %v2481_v18 }
 0x139   :  { %v411_v12 = vpop.f32.mrf.mxu0  ;;  %v484_v2 = vpop.f32.mrf.mxu1 }
 0x13a   :  { %2891 = vst [vmem:[#allocation44_spill] sm:$0xff] %v2539_v11  ;;  %2892 = vst [vmem:[#allocation45_spill] sm:$0xff] %v2542_v3  ;;  %v2544_v14 = vadd.f32 %v411_v12, %v148_v26  ;;  %v2547_v15 = vadd.f32 %v484_v2, %v2487_v23  ;;  %v380_v11 = vadd.f32 %v2477_v16, %v144_v22 }
 0x13b   :  { %v413_v19 = vpop.f32.mrf.mxu0  ;;  %v486_v25 = vpop.f32.mrf.mxu1  ;;  %v382_v2 = vadd.f32 %v2483_v20, %v148_v26 }
 0x13c   :  { %2893 = vst [vmem:[#allocation46_spill] sm:$0xff] %v2544_v14  ;;  %2894 = vst [vmem:[#allocation47_spill] sm:$0xff] %v2547_v15  ;;  %v2549_v33 = vadd.f32 %v413_v19, %v144_v22  ;;  %v2552_v29 = vadd.f32 %v486_v25, %v2481_v18  ;;  %v455_v22 = vadd.f32 %v2485_v21, %v2487_v23 }
 0x13d   :  { %v415_v30 = vpop.f32.mrf.mxu0  ;;  %v488_v34 = vpop.f32.mrf.mxu1 }
 0x13e   :  { %2895 = vst [vmem:[#allocation48_spill] sm:$0xff] %v2549_v33  ;;  %2896 = vst [vmem:[#allocation49_spill] sm:$0xff] %v2552_v29  ;;  %v2555_v55 = vadd.f32 %v415_v30, %v148_v26  ;;  %v2558_v3 = vadd.f32 %v488_v34, %v2487_v23  ;;  %v453_v34 = vadd.f32 %v2479_v17, %v2481_v18 }
 0x13f   :  { %v756_v12 = vpop.f32.mrf.mxu0  ;;  %v797_v14 = vpop.f32.mrf.mxu1 }
 0x140   :  { %v804_v15 = vadd.f32 %v756_v12, %v380_v11  ;;  %v806_v11 = vadd.f32 %v797_v14, %v453_v34 }
 0x141   :  { %v758_v24 = vpop.f32.mrf.mxu0  ;;  %v799_v19 = vpop.f32.mrf.mxu1 }
 0x142   :  { %v1783_v33 = vmul.f32 -1.442695, %v804_v15  ;;  %v805_v13 = vadd.f32 %v758_v24, %v382_v2  ;;  %v807_v30 = vadd.f32 %v799_v19, %v455_v22 }
 0x143   :  { %v760_v25 = vpop.f32.mrf.mxu0  ;;  %v801_v29 = vpop.f32.mrf.mxu1 }
 0x144   :  { %1920 = vpow2.f32 %v1783_v33  ;;  %v1784_v46 = vmul.f32 -1.442695, %v805_v13  ;;  %v1785_v20 = vmul.f32 -1.442695, %v807_v30 }
 0x145   :  { %v761_v0 = vpop.f32.mrf.mxu0  ;;  %v802_v16 = vpop.f32.mrf.mxu1 }
 0x146   :  { %1922 = vpow2.f32 %v1784_v46 }
 0x147   :  { %1924 = vpow2.f32 %v1785_v20 }
 0x151   :  { %v1921_v26 = vpop.eup %1920 }
 0x152   :  { %v811_v12 = vadd.f32 1.0, %v1921_v26 }
 0x153   :  { %v1923_v15 = vpop.eup %1922 }
 0x154   :  { %1926 = vrcp.f32 %v811_v12  ;;  %v817_v24 = vadd.f32 1.0, %v1923_v15  ;;  %v1925_v0 = vpop.eup %1924 }
 0x155   :  { %1928 = vtanh.f32 %v806_v11  ;;  %v824_v29 = vadd.f32 1.0, %v1925_v0 }
 0x156   :  { %1930 = vrcp.f32 %v817_v24 }
 0x157   :  { %1932 = vrcp.f32 %v824_v29 }
 0x161   :  { %v1927_v13 = vpop.eup %1926 }
 0x162   :  { %v1929_v46 = vpop.eup %1928 }
 0x163   :  { %v1931_v33 = vpop.eup %1930  ;;  %v828_v23 = vmul.f32 %v1929_v46, %v1927_v13 }
 0x164   :  { %v827_v21 = vmul.f32 %v1931_v33, %v2328_v1  ;;  %v1933_v17 = vpop.eup %1932  ;;  %v2897_v1 = vmov 0  }
 0x166   :  { %v2566_v2 = vadd.f32 %v828_v23, %v827_v21 }
 0x168   :  { %1934 = vtanh.f32 %v2566_v2 }
 0x175   :  { %v1935_v18 = vpop.eup %1934 }
 0x176   :  { %v831_v14 = vmul.f32 %v1935_v18, %v1933_v17 }
 0x178   :  { %v832_v19 = vpack.c.bf16 %v831_v14, %v831_v14 }
 0x17a   :  { %833 = vst [vmem:[#allocation14] sm:$0xf] %v832_v19  ;;  %871 = vmatmul.mubr.bf16.vlgmr.msra.gmra.mxu0 %v832_v19  ;;  %912 = vmatmul.mubr.bf16.vlgmr.msra.gmra.mxu1 %v832_v19 }
 0x17b   :  { %956 = vmatpush1.bf16.msra.mxu0 %v2336_v38  ;;  %997 = vmatpush1.bf16.msra.mxu1 %v2338_v39 }
 0x17c   :  { %957 = vmatprep.subr.bf16.mxu0 %v2342_v40  ;;  %998 = vmatprep.subr.bf16.mxu1 %v2344_v41 }
 0x17d   :  { %987 = vmatprep.mubr.bf16.mxu0 %v2897_v1  ;;  %1028 = vmatprep.mubr.bf16.mxu1 %v2897_v1 }
 0x17f   :  { %958 = vmatpush1.bf16.msra.mxu0 %v2346_v42  ;;  %999 = vmatpush1.bf16.msra.mxu1 %v2350_v43 }
 0x180   :  { %959 = vmatprep.subr.bf16.mxu0 %v2354_v44  ;;  %1000 = vmatprep.subr.bf16.mxu1 %v2356_v45 }
 0x183   :  { %960 = vmatpush1.bf16.msra.mxu0 %v2360_v47  ;;  %1001 = vmatpush1.bf16.msra.mxu1 %v2362_v48 }
 0x184   :  { %961 = vmatprep.subr.bf16.mxu0 %v2366_v49  ;;  %1002 = vmatprep.subr.bf16.mxu1 %v2370_v50 }
 0x187   :  { %962 = vmatpush1.bf16.msra.mxu0 %v2372_v51  ;;  %1003 = vmatpush1.bf16.msra.mxu1 %v2374_v52 }
 0x188   :  { %963 = vmatprep.subr.bf16.mxu0 %v2378_v53  ;;  %1004 = vmatprep.subr.bf16.mxu1 %v2382_v54 }
 0x18b   :  { %964 = vmatpush1.bf16.msra.mxu0 %v2388_v56  ;;  %1005 = vmatpush1.bf16.msra.mxu1 %v2390_v57 }
 0x18c   :  { %965 = vmatprep.subr.bf16.mxu0 %v2394_v58  ;;  %1006 = vmatprep.subr.bf16.mxu1 %v2396_v59 }
 0x18f   :  { %966 = vmatpush1.bf16.msra.mxu0 %v2400_v60  ;;  %1007 = vmatpush1.bf16.msra.mxu1 %v2402_v61 }
 0x190   :  { %967 = vmatprep.subr.bf16.mxu0 %v2406_v62  ;;  %1008 = vmatprep.subr.bf16.mxu1 %v2408_v63 }
 0x193   :  { %968 = vmatpush1.bf16.msra.mxu0 %v2414_v4  ;;  %1009 = vmatpush1.bf16.msra.mxu1 %v2416_v5 }
 0x194   :  { %969 = vmatprep.subr.bf16.mxu0 %v2420_v6  ;;  %1010 = vmatprep.subr.bf16.mxu1 %v2422_v7 }
 0x197   :  { %970 = vmatpush1.bf16.msra.mxu0 %v2426_v8  ;;  %1011 = vmatpush1.bf16.msra.mxu1 %v2428_v9 }
 0x198   :  { %1072 = vmatprep.subr.bf16.mxu0 %v2332_v35  ;;  %1113 = vmatprep.subr.bf16.mxu1 %v2334_v36 }
 0x23a   :  { %v872_v25 = vpop.f32.mrf.mxu0  ;;  %v913_v16 = vpop.f32.mrf.mxu1 }
 0x23b   :  { %v920_v22 = vadd.f32 %v872_v25, %v2489_v27  ;;  %v922_v46 = vadd.f32 %v913_v16, %v2492_v28 }
 0x23c   :  { %v874_v30 = vpop.f32.mrf.mxu0  ;;  %v915_v34 = vpop.f32.mrf.mxu1 }
 0x23d   :  { %v1786_v20 = vmul.f32 -1.442695, %v920_v22  ;;  %v921_v26 = vadd.f32 %v874_v30, %v2494_v31  ;;  %v923_v13 = vadd.f32 %v915_v34, %v2497_v32 }
 0x23e   :  { %v876_v11 = vpop.f32.mrf.mxu0  ;;  %v917_v12 = vpop.f32.mrf.mxu1 }
 0x23f   :  { %1936 = vpow2.f32 %v1786_v20  ;;  %v1787_v15 = vmul.f32 -1.442695, %v921_v26  ;;  %v1788_v33 = vmul.f32 -1.442695, %v923_v13 }
 0x240   :  { %v877_v24 = vpop.f32.mrf.mxu0  ;;  %v918_v0 = vpop.f32.mrf.mxu1 }
 0x241   :  { %1938 = vpow2.f32 %v1787_v15 }
 0x242   :  { %1940 = vtanh.f32 %v922_v46 }
 0x243   :  { %1942 = vpow2.f32 %v1788_v33 }
 0x24c   :  { %v1937_v29 = vpop.eup %1936 }
 0x24d   :  { %v927_v21 = vadd.f32 1.0, %v1937_v29 }
 0x24e   :  { %v1939_v27 = vpop.eup %1938 }
 0x24f   :  { %1944 = vrcp.f32 %v927_v21  ;;  %v933_v23 = vadd.f32 1.0, %v1939_v27  ;;  %v1941_v31 = vpop.eup %1940  ;;  %v2898_v21 = vld [vmem:[#allocation31_spill] sm:$0xff] }
 0x250   :  { %v1943_v17 = vpop.eup %1942 }
 0x251   :  { %1946 = vrcp.f32 %v933_v23  ;;  %v940_v25 = vadd.f32 1.0, %v1943_v17  ;;  %v2899_v23 = vld [vmem:[#allocation30_spill] sm:$0xff] }
 0x253   :  { %1948 = vrcp.f32 %v940_v25 }
 0x25c   :  { %v1945_v18 = vpop.eup %1944 }
 0x25d   :  { %v944_v14 = vmul.f32 %v1945_v18, %v1941_v31 }
 0x25e   :  { %v1947_v19 = vpop.eup %1946 }
 0x25f   :  { %v943_v22 = vmul.f32 %v1947_v19, %v2566_v2 }
 0x260   :  { %v1949_v28 = vpop.eup %1948 }
 0x261   :  { %v2608_v32 = vadd.f32 %v944_v14, %v943_v22 }
 0x263   :  { %1950 = vtanh.f32 %v2608_v32 }
 0x270   :  { %v1951_v16 = vpop.eup %1950 }
 0x271   :  { %v947_v30 = vmul.f32 %v1951_v16, %v1949_v28 }
 0x273   :  { %v948_v34 = vpack.c.bf16 %v947_v30, %v947_v30 }
 0x275   :  { %950 = vst [vmem:[#allocation14 + $0x4] sm:$0xf] %v948_v34  ;;  %988 = vmatmul.mubr.bf16.vlgmr.msra.gmra.mxu0 %v948_v34  ;;  %1029 = vmatmul.mubr.bf16.vlgmr.msra.gmra.mxu1 %v948_v34 }
 0x276   :  { %1073 = vmatpush1.bf16.msra.mxu0 %v2336_v38  ;;  %1114 = vmatpush1.bf16.msra.mxu1 %v2338_v39 }
 0x277   :  { %1074 = vmatprep.subr.bf16.mxu0 %v2342_v40  ;;  %1115 = vmatprep.subr.bf16.mxu1 %v2344_v41 }
 0x278   :  { %1104 = vmatprep.mubr.bf16.mxu0 %v2897_v1  ;;  %1145 = vmatprep.mubr.bf16.mxu1 %v2897_v1 }
 0x27a   :  { %1075 = vmatpush1.bf16.msra.mxu0 %v2346_v42  ;;  %1116 = vmatpush1.bf16.msra.mxu1 %v2350_v43 }
 0x27b   :  { %1076 = vmatprep.subr.bf16.mxu0 %v2354_v44  ;;  %1117 = vmatprep.subr.bf16.mxu1 %v2356_v45 }
 0x27e   :  { %1077 = vmatpush1.bf16.msra.mxu0 %v2360_v47  ;;  %1118 = vmatpush1.bf16.msra.mxu1 %v2362_v48 }
 0x27f   :  { %1078 = vmatprep.subr.bf16.mxu0 %v2366_v49  ;;  %1119 = vmatprep.subr.bf16.mxu1 %v2370_v50 }
 0x282   :  { %1079 = vmatpush1.bf16.msra.mxu0 %v2372_v51  ;;  %1120 = vmatpush1.bf16.msra.mxu1 %v2374_v52 }
 0x283   :  { %1080 = vmatprep.subr.bf16.mxu0 %v2378_v53  ;;  %1121 = vmatprep.subr.bf16.mxu1 %v2382_v54 }
 0x286   :  { %1081 = vmatpush1.bf16.msra.mxu0 %v2388_v56  ;;  %1122 = vmatpush1.bf16.msra.mxu1 %v2390_v57 }
 0x287   :  { %1082 = vmatprep.subr.bf16.mxu0 %v2394_v58  ;;  %1123 = vmatprep.subr.bf16.mxu1 %v2396_v59 }
 0x28a   :  { %1083 = vmatpush1.bf16.msra.mxu0 %v2400_v60  ;;  %1124 = vmatpush1.bf16.msra.mxu1 %v2402_v61 }
 0x28b   :  { %1084 = vmatprep.subr.bf16.mxu0 %v2406_v62  ;;  %1125 = vmatprep.subr.bf16.mxu1 %v2408_v63 }
 0x28e   :  { %1085 = vmatpush1.bf16.msra.mxu0 %v2414_v4  ;;  %1126 = vmatpush1.bf16.msra.mxu1 %v2416_v5 }
 0x28f   :  { %1086 = vmatprep.subr.bf16.mxu0 %v2420_v6  ;;  %1127 = vmatprep.subr.bf16.mxu1 %v2422_v7 }
 0x292   :  { %1087 = vmatpush1.bf16.msra.mxu0 %v2426_v8  ;;  %1128 = vmatpush1.bf16.msra.mxu1 %v2428_v9 }
 0x293   :  { %1189 = vmatprep.subr.bf16.mxu0 %v2332_v35  ;;  %1230 = vmatprep.subr.bf16.mxu1 %v2334_v36 }
 0x335   :  { %v989_v2 = vpop.f32.mrf.mxu0  ;;  %v1030_v20 = vpop.f32.mrf.mxu1 }
 0x336   :  { %v1037_v26 = vadd.f32 %v989_v2, %v2499_v37  ;;  %v1039_v31 = vadd.f32 %v1030_v20, %v2899_v23 }
 0x337   :  { %v991_v11 = vpop.f32.mrf.mxu0  ;;  %v1032_v12 = vpop.f32.mrf.mxu1 }
 0x338   :  { %v1789_v15 = vmul.f32 -1.442695, %v1037_v26  ;;  %v1038_v24 = vadd.f32 %v991_v11, %v2504_v10  ;;  %v1040_v27 = vadd.f32 %v1032_v12, %v2898_v21 }
 0x339   :  { %v993_v0 = vpop.f32.mrf.mxu0  ;;  %v1034_v13 = vpop.f32.mrf.mxu1 }
 0x33a   :  { %1952 = vpow2.f32 %v1789_v15  ;;  %v1790_v46 = vmul.f32 -1.442695, %v1038_v24  ;;  %v1791_v17 = vmul.f32 -1.442695, %v1040_v27  ;;  %v2900_v24 = vld [vmem:[#allocation32_spill] sm:$0xff] }
 0x33b   :  { %v994_v33 = vpop.f32.mrf.mxu0  ;;  %v1035_v29 = vpop.f32.mrf.mxu1 }
 0x33c   :  { %1954 = vpow2.f32 %v1790_v46  ;;  %v2901_v29 = vld [vmem:[#allocation34_spill] sm:$0xff] }
 0x33d   :  { %1956 = vtanh.f32 %v1039_v31 }
 0x33e   :  { %1958 = vpow2.f32 %v1791_v17 }
 0x347   :  { %v1953_v18 = vpop.eup %1952 }
 0x348   :  { %v1044_v14 = vadd.f32 1.0, %v1953_v18 }
 0x349   :  { %v1955_v37 = vpop.eup %1954 }
 0x34a   :  { %1960 = vrcp.f32 %v1044_v14  ;;  %v1050_v19 = vadd.f32 1.0, %v1955_v37  ;;  %v1957_v10 = vpop.eup %1956  ;;  %v2902_v14 = vld [vmem:[#allocation35_spill] sm:$0xff]  ;;  %v2903_v37 = vld [vmem:[#allocation33_spill] sm:$0xff] }
 0x34b   :  { %v1959_v25 = vpop.eup %1958 }
 0x34c   :  { %1962 = vrcp.f32 %v1050_v19  ;;  %v1057_v30 = vadd.f32 1.0, %v1959_v25 }
 0x34e   :  { %1964 = vrcp.f32 %v1057_v30 }
 0x357   :  { %v1961_v22 = vpop.eup %1960 }
 0x358   :  { %v1061_v28 = vmul.f32 %v1961_v22, %v1957_v10 }
 0x359   :  { %v1963_v16 = vpop.eup %1962 }
 0x35a   :  { %v1060_v34 = vmul.f32 %v1963_v16, %v2608_v32 }
 0x35b   :  { %v1965_v20 = vpop.eup %1964 }
 0x35c   :  { %v2650_v2 = vadd.f32 %v1061_v28, %v1060_v34 }
 0x35e   :  { %1966 = vtanh.f32 %v2650_v2 }
 0x36b   :  { %v1967_v26 = vpop.eup %1966 }
 0x36c   :  { %v1064_v11 = vmul.f32 %v1967_v26, %v1965_v20 }
 0x36e   :  { %v1065_v12 = vpack.c.bf16 %v1064_v11, %v1064_v11 }
 0x370   :  { %1067 = vst [vmem:[#allocation14 + $0x8] sm:$0xf] %v1065_v12  ;;  %1105 = vmatmul.mubr.bf16.vlgmr.msra.gmra.mxu0 %v1065_v12  ;;  %1146 = vmatmul.mubr.bf16.vlgmr.msra.gmra.mxu1 %v1065_v12 }
 0x371   :  { %1190 = vmatpush1.bf16.msra.mxu0 %v2336_v38  ;;  %1231 = vmatpush1.bf16.msra.mxu1 %v2338_v39 }
 0x372   :  { %1191 = vmatprep.subr.bf16.mxu0 %v2342_v40  ;;  %1232 = vmatprep.subr.bf16.mxu1 %v2344_v41 }
 0x373   :  { %1221 = vmatprep.mubr.bf16.mxu0 %v2897_v1  ;;  %1262 = vmatprep.mubr.bf16.mxu1 %v2897_v1 }
 0x375   :  { %1192 = vmatpush1.bf16.msra.mxu0 %v2346_v42  ;;  %1233 = vmatpush1.bf16.msra.mxu1 %v2350_v43 }
 0x376   :  { %1193 = vmatprep.subr.bf16.mxu0 %v2354_v44  ;;  %1234 = vmatprep.subr.bf16.mxu1 %v2356_v45 }
 0x379   :  { %1194 = vmatpush1.bf16.msra.mxu0 %v2360_v47  ;;  %1235 = vmatpush1.bf16.msra.mxu1 %v2362_v48 }
 0x37a   :  { %1195 = vmatprep.subr.bf16.mxu0 %v2366_v49  ;;  %1236 = vmatprep.subr.bf16.mxu1 %v2370_v50 }
 0x37d   :  { %1196 = vmatpush1.bf16.msra.mxu0 %v2372_v51  ;;  %1237 = vmatpush1.bf16.msra.mxu1 %v2374_v52 }
 0x37e   :  { %1197 = vmatprep.subr.bf16.mxu0 %v2378_v53  ;;  %1238 = vmatprep.subr.bf16.mxu1 %v2382_v54 }
 0x381   :  { %1198 = vmatpush1.bf16.msra.mxu0 %v2388_v56  ;;  %1239 = vmatpush1.bf16.msra.mxu1 %v2390_v57 }
 0x382   :  { %1199 = vmatprep.subr.bf16.mxu0 %v2394_v58  ;;  %1240 = vmatprep.subr.bf16.mxu1 %v2396_v59 }
 0x385   :  { %1200 = vmatpush1.bf16.msra.mxu0 %v2400_v60  ;;  %1241 = vmatpush1.bf16.msra.mxu1 %v2402_v61 }
 0x386   :  { %1201 = vmatprep.subr.bf16.mxu0 %v2406_v62  ;;  %1242 = vmatprep.subr.bf16.mxu1 %v2408_v63 }
 0x389   :  { %1202 = vmatpush1.bf16.msra.mxu0 %v2414_v4  ;;  %1243 = vmatpush1.bf16.msra.mxu1 %v2416_v5 }
 0x38a   :  { %1203 = vmatprep.subr.bf16.mxu0 %v2420_v6  ;;  %1244 = vmatprep.subr.bf16.mxu1 %v2422_v7 }
 0x38d   :  { %1204 = vmatpush1.bf16.msra.mxu0 %v2426_v8  ;;  %1245 = vmatpush1.bf16.msra.mxu1 %v2428_v9 }
 0x38e   :  { %1306 = vmatprep.subr.bf16.mxu0 %v2332_v35  ;;  %1347 = vmatprep.subr.bf16.mxu1 %v2334_v36 }
 0x430   :  { %v1106_v32 = vpop.f32.mrf.mxu0  ;;  %v1147_v15 = vpop.f32.mrf.mxu1 }
 0x431   :  { %v1154_v0 = vadd.f32 %v1106_v32, %v2900_v24  ;;  %v1156_v36 = vadd.f32 %v1147_v15, %v2903_v37 }
 0x432   :  { %v1108_v13 = vpop.f32.mrf.mxu0  ;;  %v1149_v46 = vpop.f32.mrf.mxu1 }
 0x433   :  { %v1792_v33 = vmul.f32 -1.442695, %v1154_v0  ;;  %v1155_v21 = vadd.f32 %v1108_v13, %v2901_v29  ;;  %v1157_v35 = vadd.f32 %v1149_v46, %v2902_v14 }
 0x434   :  { %v1110_v27 = vpop.f32.mrf.mxu0  ;;  %v1151_v23 = vpop.f32.mrf.mxu1 }
 0x435   :  { %1968 = vpow2.f32 %v1792_v33  ;;  %v1793_v31 = vmul.f32 -1.442695, %v1155_v21  ;;  %v1794_v19 = vmul.f32 -1.442695, %v1157_v35 }
 0x436   :  { %v1111_v17 = vpop.f32.mrf.mxu0  ;;  %v1152_v18 = vpop.f32.mrf.mxu1 }
 0x437   :  { %1970 = vpow2.f32 %v1793_v31 }
 0x438   :  { %1972 = vtanh.f32 %v1156_v36 }
 0x439   :  { %1974 = vpow2.f32 %v1794_v19 }
 0x442   :  { %v1969_v10 = vpop.eup %1968 }
 0x443   :  { %v1161_v25 = vadd.f32 1.0, %v1969_v10 }
 0x444   :  { %v1971_v22 = vpop.eup %1970 }
 0x445   :  { %1976 = vrcp.f32 %v1161_v25  ;;  %v1167_v28 = vadd.f32 1.0, %v1971_v22  ;;  %v1973_v16 = vpop.eup %1972  ;;  %v2741_v22 = vld [vmem:[#allocation6 + $0xe0] ss:$16 sps:$4 sm:$0xff]  }
 0x446   :  { %v1975_v30 = vpop.eup %1974 }
 0x447   :  { %1978 = vrcp.f32 %v1167_v28  ;;  %v1174_v11 = vadd.f32 1.0, %v1975_v30  ;;  %v2744_v28 = vld [vmem:[#allocation6 + $0xe8] ss:$16 sps:$4 sm:$0xff]   ;;  %v2750_v30 = vld [vmem:[#allocation6 + $0xcc] ss:$16 sps:$4 sm:$0xff]  }
 0x449   :  { %1980 = vrcp.f32 %v1174_v11  ;;  %v2764_v11 = vld [vmem:[#allocation6 + $0xac] ss:$16 sps:$4 sm:$0xff]  }
 0x452   :  { %v1977_v34 = vpop.eup %1976 }
 0x453   :  { %v1178_v20 = vmul.f32 %v1977_v34, %v1973_v16  ;;  %v2747_v16 = vld [vmem:[#allocation6 + $0xc4] ss:$16 sps:$4 sm:$0xff]   ;;  %v2755_v34 = vld [vmem:[#allocation6 + $0xc0] ss:$16 sps:$4 sm:$0xff]  }
 0x454   :  { %v1979_v26 = vpop.eup %1978 }
 0x455   :  { %v1177_v12 = vmul.f32 %v1979_v26, %v2650_v2  ;;  %v2761_v26 = vld [vmem:[#allocation6 + $0xa4] ss:$16 sps:$4 sm:$0xff]  }
 0x456   :  { %v1981_v15 = vpop.eup %1980 }
 0x457   :  { %v2692_v32 = vadd.f32 %v1178_v20, %v1177_v12  ;;  %v2758_v20 = vld [vmem:[#allocation6 + $0xc8] ss:$16 sps:$4 sm:$0xff]   ;;  %v2767_v12 = vld [vmem:[#allocation6 + $0xa0] ss:$16 sps:$4 sm:$0xff]  }
 0x459   :  { %1982 = vtanh.f32 %v2692_v32 }
 0x466   :  { %v1983_v24 = vpop.eup %1982 }
 0x467   :  { %v1181_v0 = vmul.f32 %v1983_v24, %v1981_v15  ;;  %v2773_v15 = vld [vmem:[#allocation6 + $0x84] ss:$16 sps:$4 sm:$0xff]   ;;  %v2776_v24 = vld [vmem:[#allocation6 + $0x8c] ss:$16 sps:$4 sm:$0xff]  }
 0x469   :  { %v1182_v13 = vpack.c.bf16 %v1181_v0, %v1181_v0  ;;  %v2779_v0 = vld [vmem:[#allocation6 + $0x80] ss:$16 sps:$4 sm:$0xff]  }
 0x46b   :  { %1184 = vst [vmem:[#allocation14 + $0xc] sm:$0xf] %v1182_v13  ;;  %1222 = vmatmul.mubr.bf16.vlgmr.msra.gmra.mxu0 %v1182_v13  ;;  %1263 = vmatmul.mubr.bf16.vlgmr.msra.gmra.mxu1 %v1182_v13  ;;  %v2782_v13 = vld [vmem:[#allocation6 + $0x88] ss:$16 sps:$4 sm:$0xff]  }
 0x46c   :  { %1307 = vmatpush1.bf16.msra.mxu0 %v2336_v38  ;;  %1348 = vmatpush1.bf16.msra.mxu1 %v2338_v39  ;;  %v2727_v38 = vld [vmem:[#allocation6 + $0xe4] ss:$16 sps:$4 sm:$0xff]   ;;  %v2730_v39 = vld [vmem:[#allocation6 + $0xec] ss:$16 sps:$4 sm:$0xff]  }
 0x46d   :  { %1308 = vmatprep.subr.bf16.mxu0 %v2342_v40  ;;  %1349 = vmatprep.subr.bf16.mxu1 %v2344_v41 }
 0x46e   :  { %1338 = vmatprep.mubr.bf16.mxu0 %v2897_v1  ;;  %1379 = vmatprep.mubr.bf16.mxu1 %v2897_v1 }
 0x470   :  { %1309 = vmatpush1.bf16.msra.mxu0 %v2346_v42  ;;  %1350 = vmatpush1.bf16.msra.mxu1 %v2350_v43  ;;  %v2904_v42 = vld [vmem:[#allocation36_spill] sm:$0xff] }
 0x471   :  { %1310 = vmatprep.subr.bf16.mxu0 %v2354_v44  ;;  %1351 = vmatprep.subr.bf16.mxu1 %v2356_v45 }
 0x474   :  { %1311 = vmatpush1.bf16.msra.mxu0 %v2360_v47  ;;  %1352 = vmatpush1.bf16.msra.mxu1 %v2362_v48  ;;  %v2905_v48 = vld [vmem:[#allocation38_spill] sm:$0xff] }
 0x475   :  { %1312 = vmatprep.subr.bf16.mxu0 %v2366_v49  ;;  %1353 = vmatprep.subr.bf16.mxu1 %v2370_v50 }
 0x478   :  { %1313 = vmatpush1.bf16.msra.mxu0 %v2372_v51  ;;  %1354 = vmatpush1.bf16.msra.mxu1 %v2374_v52 }
 0x479   :  { %1314 = vmatprep.subr.bf16.mxu0 %v2378_v53  ;;  %1355 = vmatprep.subr.bf16.mxu1 %v2382_v54 }
 0x47c   :  { %1315 = vmatpush1.bf16.msra.mxu0 %v2388_v56  ;;  %1356 = vmatpush1.bf16.msra.mxu1 %v2390_v57  ;;  %v2906_v56 = vld [vmem:[#allocation39_spill] sm:$0xff] }
 0x47d   :  { %1316 = vmatprep.subr.bf16.mxu0 %v2394_v58  ;;  %1357 = vmatprep.subr.bf16.mxu1 %v2396_v59  ;;  %v2907_v58 = vld [vmem:[#allocation37_spill] sm:$0xff] }
 0x480   :  { %1317 = vmatpush1.bf16.msra.mxu0 %v2400_v60  ;;  %1358 = vmatpush1.bf16.msra.mxu1 %v2402_v61 }
 0x481   :  { %1318 = vmatprep.subr.bf16.mxu0 %v2406_v62  ;;  %1359 = vmatprep.subr.bf16.mxu1 %v2408_v63 }
 0x484   :  { %1319 = vmatpush1.bf16.msra.mxu0 %v2414_v4  ;;  %1360 = vmatpush1.bf16.msra.mxu1 %v2416_v5 }
 0x485   :  { %1320 = vmatprep.subr.bf16.mxu0 %v2420_v6  ;;  %1361 = vmatprep.subr.bf16.mxu1 %v2422_v7 }
 0x488   :  { %1321 = vmatpush1.bf16.msra.mxu0 %v2426_v8  ;;  %1362 = vmatpush1.bf16.msra.mxu1 %v2428_v9 }
 0x489   :  { %1423 = vmatprep.subr.bf16.mxu0 %v2727_v38  ;;  %1464 = vmatprep.subr.bf16.mxu1 %v2730_v39 }
 0x52b   :  { %v1223_v40 = vpop.f32.mrf.mxu0  ;;  %v1264_v41 = vpop.f32.mrf.mxu1 }
 0x52c   :  { %v1271_v43 = vadd.f32 %v1223_v40, %v2904_v42  ;;  %v1273_v59 = vadd.f32 %v1264_v41, %v2907_v58  ;;  %v2785_v40 = vld [vmem:[#allocation6 + $0x64] ss:$16 sps:$4 sm:$0xff]   ;;  %v2788_v41 = vld [vmem:[#allocation6 + $0x6c] ss:$16 sps:$4 sm:$0xff]   ;;  %v2791_v42 = vld [vmem:[#allocation6 + $0x60] ss:$16 sps:$4 sm:$0xff]  }
 0x52d   :  { %v1225_v44 = vpop.f32.mrf.mxu0  ;;  %v1266_v45 = vpop.f32.mrf.mxu1 }
 0x52e   :  { %v1795_v47 = vmul.f32 -1.442695, %v1271_v43  ;;  %v1272_v49 = vadd.f32 %v1225_v44, %v2905_v48  ;;  %v1274_v57 = vadd.f32 %v1266_v45, %v2906_v56  ;;  %v2794_v43 = vld [vmem:[#allocation6 + $0x68] ss:$16 sps:$4 sm:$0xff]   ;;  %v2797_v44 = vld [vmem:[#allocation6 + $0x44] ss:$16 sps:$4 sm:$0xff]  }
 0x52f   :  { %v1227_v50 = vpop.f32.mrf.mxu0  ;;  %v1268_v51 = vpop.f32.mrf.mxu1  ;;  %v2800_v45 = vld [vmem:[#allocation6 + $0x4c] ss:$16 sps:$4 sm:$0xff]  }
 0x530   :  { %1984 = vpow2.f32 %v1795_v47  ;;  %v1796_v52 = vmul.f32 -1.442695, %v1272_v49  ;;  %v1797_v2 = vmul.f32 -1.442695, %v1274_v57 }
 0x531   :  { %v1228_v53 = vpop.f32.mrf.mxu0  ;;  %v1269_v54 = vpop.f32.mrf.mxu1 }
 0x532   :  { %1986 = vpow2.f32 %v1796_v52  ;;  %v2911_v52 = vld [vmem:[#allocation41_spill] sm:$0xff] }
 0x533   :  { %1988 = vtanh.f32 %v1273_v59 }
 0x534   :  { %1990 = vpow2.f32 %v1797_v2 }
 0x53d   :  { %v1985_v46 = vpop.eup %1984 }
 0x53e   :  { %v1278_v33 = vadd.f32 1.0, %v1985_v46 }
 0x53f   :  { %v1987_v29 = vpop.eup %1986 }
 0x540   :  { %1992 = vrcp.f32 %v1278_v33  ;;  %v1284_v21 = vadd.f32 1.0, %v1987_v29  ;;  %v1989_v27 = vpop.eup %1988 }
 0x541   :  { %v1991_v23 = vpop.eup %1990 }
 0x542   :  { %1994 = vrcp.f32 %v1284_v21  ;;  %v1291_v14 = vadd.f32 1.0, %v1991_v23 }
 0x544   :  { %1996 = vrcp.f32 %v1291_v14 }
 0x54d   :  { %v1993_v31 = vpop.eup %1992 }
 0x54e   :  { %v1295_v17 = vmul.f32 %v1993_v31, %v1989_v27 }
 0x54f   :  { %v1995_v18 = vpop.eup %1994 }
 0x550   :  { %v1294_v35 = vmul.f32 %v1995_v18, %v2692_v32  ;;  %v2770_v32 = vld [vmem:[#allocation6 + $0xa8] ss:$16 sps:$4 sm:$0xff]  }
 0x551   :  { %v1997_v36 = vpop.eup %1996 }
 0x552   :  { %v2738_v37 = vadd.f32 %v1295_v17, %v1294_v35  ;;  %v2071_v35 = vld [vmem:[#allocation6 + $0x48] ss:$16 sps:$4 sm:$0xff]  }
 0x554   :  { %1998 = vtanh.f32 %v2738_v37 }
 0x561   :  { %v1999_v19 = vpop.eup %1998 }
 0x562   :  { %v1298_v10 = vmul.f32 %v1999_v19, %v1997_v36  ;;  %v2073_v36 = vld [vmem:[#allocation6 + $0x2c] ss:$16 sps:$4 sm:$0xff]   ;;  %v2074_v19 = vld [vmem:[#allocation6 + $0x20] ss:$16 sps:$4 sm:$0xff]  }
 0x564   :  { %v1299_v25 = vpack.c.bf16 %v1298_v10, %v1298_v10  ;;  %v2075_v10 = vld [vmem:[#allocation6 + $0x28] ss:$16 sps:$4 sm:$0xff]  }
 0x566   :  { %1301 = vst [vmem:[#allocation14 + $0x10] sm:$0xf] %v1299_v25  ;;  %1339 = vmatmul.mubr.bf16.vlgmr.msra.gmra.mxu0 %v1299_v25  ;;  %1380 = vmatmul.mubr.bf16.vlgmr.msra.gmra.mxu1 %v1299_v25  ;;  %v2076_v25 = vld [vmem:[#allocation6 + $0x4] ss:$16 sps:$4 sm:$0xff]  }
 0x567   :  { %1424 = vmatpush1.bf16.msra.mxu0 %v2741_v22  ;;  %1465 = vmatpush1.bf16.msra.mxu1 %v2744_v28 }
 0x568   :  { %1425 = vmatprep.subr.bf16.mxu0 %v2747_v16  ;;  %1466 = vmatprep.subr.bf16.mxu1 %v2750_v30 }
 0x569   :  { %1455 = vmatprep.mubr.bf16.mxu0 %v2897_v1  ;;  %1496 = vmatprep.mubr.bf16.mxu1 %v2897_v1 }
 0x56b   :  { %1426 = vmatpush1.bf16.msra.mxu0 %v2755_v34  ;;  %1467 = vmatpush1.bf16.msra.mxu1 %v2758_v20 }
 0x56c   :  { %1427 = vmatprep.subr.bf16.mxu0 %v2761_v26  ;;  %1468 = vmatprep.subr.bf16.mxu1 %v2764_v11 }
 0x56f   :  { %1428 = vmatpush1.bf16.msra.mxu0 %v2767_v12  ;;  %1469 = vmatpush1.bf16.msra.mxu1 %v2770_v32 }
 0x570   :  { %1429 = vmatprep.subr.bf16.mxu0 %v2773_v15  ;;  %1470 = vmatprep.subr.bf16.mxu1 %v2776_v24 }
 0x573   :  { %1430 = vmatpush1.bf16.msra.mxu0 %v2779_v0  ;;  %1471 = vmatpush1.bf16.msra.mxu1 %v2782_v13 }
 0x574   :  { %1431 = vmatprep.subr.bf16.mxu0 %v2785_v40  ;;  %1472 = vmatprep.subr.bf16.mxu1 %v2788_v41 }
 0x577   :  { %1432 = vmatpush1.bf16.msra.mxu0 %v2791_v42  ;;  %1473 = vmatpush1.bf16.msra.mxu1 %v2794_v43 }
 0x578   :  { %1433 = vmatprep.subr.bf16.mxu0 %v2797_v44  ;;  %1474 = vmatprep.subr.bf16.mxu1 %v2800_v45 }
 0x57b   :  { %1434 = vmatpush1.bf16.msra.mxu0 %v2400_v60  ;;  %1475 = vmatpush1.bf16.msra.mxu1 %v2402_v61 }
 0x57c   :  { %1435 = vmatprep.subr.bf16.mxu0 %v2406_v62  ;;  %1476 = vmatprep.subr.bf16.mxu1 %v2408_v63  ;;  %v2908_v62 = vld [vmem:[#allocation40_spill] sm:$0xff] }
 0x57f   :  { %1436 = vmatpush1.bf16.msra.mxu0 %v2414_v4  ;;  %1477 = vmatpush1.bf16.msra.mxu1 %v2416_v5  ;;  %v2909_v5 = vld [vmem:[#allocation42_spill] sm:$0xff] }
 0x580   :  { %1437 = vmatprep.subr.bf16.mxu0 %v2420_v6  ;;  %1478 = vmatprep.subr.bf16.mxu1 %v2422_v7 }
 0x583   :  { %1438 = vmatpush1.bf16.msra.mxu0 %v2426_v8  ;;  %1479 = vmatpush1.bf16.msra.mxu1 %v2428_v9  ;;  %v2910_v9 = vld [vmem:[#allocation43_spill] sm:$0xff] }
 0x584   :  { %1540 = vmatprep.subr.bf16.mxu0 %v2727_v38  ;;  %1581 = vmatprep.subr.bf16.mxu1 %v2730_v39 }
 0x626   :  { %v1340_v60 = vpop.f32.mrf.mxu0  ;;  %v1381_v61 = vpop.f32.mrf.mxu1 }
 0x627   :  { %v1388_v63 = vadd.f32 %v1340_v60, %v2908_v62  ;;  %v1390_v39 = vadd.f32 %v1381_v61, %v2911_v52 }
 0x628   :  { %v1342_v47 = vpop.f32.mrf.mxu0  ;;  %v1383_v4 = vpop.f32.mrf.mxu1 }
 0x629   :  { %v1798_v48 = vmul.f32 -1.442695, %v1388_v63  ;;  %v1389_v49 = vadd.f32 %v1342_v47, %v2909_v5  ;;  %v1391_v38 = vadd.f32 %v1383_v4, %v2910_v9 }
 0x62a   :  { %v1344_v6 = vpop.f32.mrf.mxu0  ;;  %v1385_v50 = vpop.f32.mrf.mxu1 }
 0x62b   :  { %2000 = vpow2.f32 %v1798_v48  ;;  %v1799_v7 = vmul.f32 -1.442695, %v1389_v49  ;;  %v1800_v53 = vmul.f32 -1.442695, %v1391_v38 }
 0x62c   :  { %v1345_v8 = vpop.f32.mrf.mxu0  ;;  %v1386_v51 = vpop.f32.mrf.mxu1 }
 0x62d   :  { %2002 = vpow2.f32 %v1799_v7 }
 0x62e   :  { %2004 = vtanh.f32 %v1390_v39 }
 0x62f   :  { %2006 = vpow2.f32 %v1800_v53 }
 0x638   :  { %v2001_v54 = vpop.eup %2000 }
 0x639   :  { %v1395_v56 = vadd.f32 1.0, %v2001_v54 }
 0x63a   :  { %v2003_v57 = vpop.eup %2002 }
 0x63b   :  { %2008 = vrcp.f32 %v1395_v56  ;;  %v1401_v58 = vadd.f32 1.0, %v2003_v57  ;;  %v2005_v59 = vpop.eup %2004  ;;  %v2916_v56 = vld [vmem:[#allocation48_spill] sm:$0xff] }
 0x63c   :  { %v2007_v2 = vpop.eup %2006 }
 0x63d   :  { %2010 = vrcp.f32 %v1401_v58  ;;  %v1408_v21 = vadd.f32 1.0, %v2007_v2 }
 0x63f   :  { %2012 = vrcp.f32 %v1408_v21 }
 0x648   :  { %v2009_v46 = vpop.eup %2008 }
 0x649   :  { %v1412_v33 = vmul.f32 %v2009_v46, %v2005_v59 }
 0x64a   :  { %v2011_v29 = vpop.eup %2010 }
 0x64b   :  { %v1411_v27 = vmul.f32 %v2011_v29, %v2738_v37  ;;  %v2072_v37 = vld [vmem:[#allocation6 + $0x24] ss:$16 sps:$4 sm:$0xff]  }
 0x64c   :  { %v2013_v31 = vpop.eup %2012 }
 0x64d   :  { %v2820_v23 = vadd.f32 %v1412_v33, %v1411_v27 }
 0x64f   :  { %2014 = vtanh.f32 %v2820_v23 }
 0x65c   :  { %v2015_v17 = vpop.eup %2014 }
 0x65d   :  { %v1415_v18 = vmul.f32 %v2015_v17, %v2013_v31  ;;  %v2917_v17 = vld [vmem:[#allocation49_spill] sm:$0xff] }
 0x65f   :  { %v1416_v14 = vpack.c.bf16 %v1415_v18, %v1415_v18 }
 0x661   :  { %1418 = vst [vmem:[#allocation14 + $0x14] sm:$0xf] %v1416_v14  ;;  %1456 = vmatmul.mubr.bf16.vlgmr.msra.gmra.mxu0 %v1416_v14  ;;  %1497 = vmatmul.mubr.bf16.vlgmr.msra.gmra.mxu1 %v1416_v14 }
 0x662   :  { %1541 = vmatpush1.bf16.msra.mxu0 %v2741_v22  ;;  %1582 = vmatpush1.bf16.msra.mxu1 %v2744_v28  ;;  %v2077_v22 = vld [vmem:[#allocation6 + $0xc] ss:$16 sps:$4 sm:$0xff]   ;;  %v2078_v28 = vld [vmem:[#allocation6] ss:$16 sps:$4 sm:$0xff]  }
 0x663   :  { %1542 = vmatprep.subr.bf16.mxu0 %v2747_v16  ;;  %1583 = vmatprep.subr.bf16.mxu1 %v2750_v30  ;;  %v2079_v16 = vld [vmem:[#allocation6 + $0x8] ss:$16 sps:$4 sm:$0xff]  }
 0x664   :  { %1572 = vmatprep.mubr.bf16.mxu0 %v2897_v1  ;;  %1613 = vmatprep.mubr.bf16.mxu1 %v2897_v1  ;;  %v2070_v1 = vld [vmem:[#allocation6 + $0x40] ss:$16 sps:$4 sm:$0xff]  }
 0x666   :  { %1543 = vmatpush1.bf16.msra.mxu0 %v2755_v34  ;;  %1584 = vmatpush1.bf16.msra.mxu1 %v2758_v20  ;;  %v2912_v20 = vld [vmem:[#allocation44_spill] sm:$0xff] }
 0x667   :  { %1544 = vmatprep.subr.bf16.mxu0 %v2761_v26  ;;  %1585 = vmatprep.subr.bf16.mxu1 %v2764_v11 }
 0x66a   :  { %1545 = vmatpush1.bf16.msra.mxu0 %v2767_v12  ;;  %1586 = vmatpush1.bf16.msra.mxu1 %v2770_v32 }
 0x66b   :  { %1546 = vmatprep.subr.bf16.mxu0 %v2773_v15  ;;  %1587 = vmatprep.subr.bf16.mxu1 %v2776_v24  ;;  %v2913_v15 = vld [vmem:[#allocation46_spill] sm:$0xff] }
 0x66e   :  { %1547 = vmatpush1.bf16.msra.mxu0 %v2779_v0  ;;  %1588 = vmatpush1.bf16.msra.mxu1 %v2782_v13 }
 0x66f   :  { %1548 = vmatprep.subr.bf16.mxu0 %v2785_v40  ;;  %1589 = vmatprep.subr.bf16.mxu1 %v2788_v41 }
 0x672   :  { %1549 = vmatpush1.bf16.msra.mxu0 %v2791_v42  ;;  %1590 = vmatpush1.bf16.msra.mxu1 %v2794_v43  ;;  %v2914_v43 = vld [vmem:[#allocation47_spill] sm:$0xff] }
 0x673   :  { %1550 = vmatprep.subr.bf16.mxu0 %v2797_v44  ;;  %1591 = vmatprep.subr.bf16.mxu1 %v2800_v45  ;;  %v2915_v45 = vld [vmem:[#allocation45_spill] sm:$0xff] }
 0x676   :  { %1551 = vmatpush1.bf16.msra.mxu0 %v2070_v1  ;;  %1592 = vmatpush1.bf16.msra.mxu1 %v2071_v35 }
 0x677   :  { %1552 = vmatprep.subr.bf16.mxu0 %v2072_v37  ;;  %1593 = vmatprep.subr.bf16.mxu1 %v2073_v36 }
 0x67a   :  { %1553 = vmatpush1.bf16.msra.mxu0 %v2074_v19  ;;  %1594 = vmatpush1.bf16.msra.mxu1 %v2075_v10 }
 0x67b   :  { %1554 = vmatprep.subr.bf16.mxu0 %v2076_v25  ;;  %1595 = vmatprep.subr.bf16.mxu1 %v2077_v22 }
 0x67e   :  { %1555 = vmatpush1.bf16.msra.mxu0 %v2078_v28  ;;  %1596 = vmatpush1.bf16.msra.mxu1 %v2079_v16 }
 0x721   :  { %v1457_v30 = vpop.f32.mrf.mxu0  ;;  %v1498_v34 = vpop.f32.mrf.mxu1 }
 0x722   :  { %v1505_v26 = vadd.f32 %v1457_v30, %v2912_v20  ;;  %v1507_v60 = vadd.f32 %v1498_v34, %v2915_v45 }
 0x723   :  { %v1459_v11 = vpop.f32.mrf.mxu0  ;;  %v1500_v12 = vpop.f32.mrf.mxu1 }
 0x724   :  { %v1801_v32 = vmul.f32 -1.442695, %v1505_v26  ;;  %v1506_v24 = vadd.f32 %v1459_v11, %v2913_v15  ;;  %v1508_v44 = vadd.f32 %v1500_v12, %v2914_v43 }
 0x725   :  { %v1461_v0 = vpop.f32.mrf.mxu0  ;;  %v1502_v13 = vpop.f32.mrf.mxu1 }
 0x726   :  { %2016 = vpow2.f32 %v1801_v32  ;;  %v1802_v40 = vmul.f32 -1.442695, %v1506_v24  ;;  %v1803_v61 = vmul.f32 -1.442695, %v1508_v44 }
 0x727   :  { %v1462_v41 = vpop.f32.mrf.mxu0  ;;  %v1503_v42 = vpop.f32.mrf.mxu1 }
 0x728   :  { %2018 = vpow2.f32 %v1802_v40 }
 0x729   :  { %2020 = vtanh.f32 %v1507_v60 }
 0x72a   :  { %2022 = vpow2.f32 %v1803_v61 }
 0x733   :  { %v2017_v62 = vpop.eup %2016 }
 0x734   :  { %v1512_v63 = vadd.f32 1.0, %v2017_v62 }
 0x735   :  { %v2019_v47 = vpop.eup %2018 }
 0x736   :  { %2024 = vrcp.f32 %v1512_v63  ;;  %v1518_v4 = vadd.f32 1.0, %v2019_v47  ;;  %v2021_v48 = vpop.eup %2020 }
 0x737   :  { %v2023_v5 = vpop.eup %2022 }
 0x738   :  { %2026 = vrcp.f32 %v1518_v4  ;;  %v1525_v7 = vadd.f32 1.0, %v2023_v5 }
 0x73a   :  { %2028 = vrcp.f32 %v1525_v7 }
 0x743   :  { %v2025_v49 = vpop.eup %2024 }
 0x744   :  { %v1529_v6 = vmul.f32 %v2025_v49, %v2021_v48 }
 0x745   :  { %v2027_v50 = vpop.eup %2026 }
 0x746   :  { %v1528_v8 = vmul.f32 %v2027_v50, %v2820_v23 }
 0x747   :  { %v2029_v9 = vpop.eup %2028 }
 0x748   :  { %v1530_v51 = vadd.f32 %v1529_v6, %v1528_v8 }
 0x74a   :  { %2030 = vtanh.f32 %v1530_v51 }
 0x757   :  { %v2031_v38 = vpop.eup %2030 }
 0x758   :  { %v1532_v52 = vmul.f32 %v2031_v38, %v2029_v9 }
 0x75a   :  { %v1533_v39 = vpack.c.bf16 %v1532_v52, %v1532_v52 }
 0x75c   :  { %1535 = vst [vmem:[#allocation14 + $0x18] sm:$0xf] %v1533_v39  ;;  %1573 = vmatmul.mubr.bf16.vlgmr.msra.gmra.mxu0 %v1533_v39  ;;  %1614 = vmatmul.mubr.bf16.vlgmr.msra.gmra.mxu1 %v1533_v39 }
 0x81c   :  { %v1574_v53 = vpop.f32.mrf.mxu0  ;;  %v1615_v54 = vpop.f32.mrf.mxu1 }
 0x81d   :  { %v1622_v57 = vadd.f32 %v1574_v53, %v2916_v56  ;;  %v1624_v18 = vadd.f32 %v1615_v54, %v2917_v17 }
 0x81e   :  { %v1576_v58 = vpop.f32.mrf.mxu0  ;;  %v1617_v59 = vpop.f32.mrf.mxu1 }
 0x81f   :  { %v1804_v2 = vmul.f32 -1.442695, %v1622_v57  ;;  %v1623_v46 = vadd.f32 %v1576_v58, %v2555_v55  ;;  %v1625_v31 = vadd.f32 %v1617_v59, %v2558_v3 }
 0x820   :  { %v1578_v33 = vpop.f32.mrf.mxu0  ;;  %v1619_v29 = vpop.f32.mrf.mxu1 }
 0x821   :  { %2032 = vpow2.f32 %v1804_v2  ;;  %v1805_v21 = vmul.f32 -1.442695, %v1623_v46  ;;  %v1806_v14 = vmul.f32 -1.442695, %v1625_v31 }
 0x822   :  { %v1579_v27 = vpop.f32.mrf.mxu0  ;;  %v1620_v23 = vpop.f32.mrf.mxu1 }
 0x823   :  { %2034 = vpow2.f32 %v1805_v21 }
 0x824   :  { %2036 = vtanh.f32 %v1624_v18 }
 0x825   :  { %2038 = vpow2.f32 %v1806_v14 }
 0x82e   :  { %v2033_v1 = vpop.eup %2032 }
 0x82f   :  { %v1629_v35 = vadd.f32 1.0, %v2033_v1 }
 0x830   :  { %v2035_v37 = vpop.eup %2034 }
 0x831   :  { %2040 = vrcp.f32 %v1629_v35  ;;  %v1635_v36 = vadd.f32 1.0, %v2035_v37  ;;  %v2037_v55 = vpop.eup %2036 }
 0x832   :  { %v2039_v19 = vpop.eup %2038 }
 0x833   :  { %2042 = vrcp.f32 %v1635_v36  ;;  %v1642_v28 = vadd.f32 1.0, %v2039_v19 }
 0x835   :  { %2044 = vrcp.f32 %v1642_v28 }
 0x83e   :  { %v2041_v10 = vpop.eup %2040 }
 0x83f   :  { %v1646_v25 = vmul.f32 %v2041_v10, %v2037_v55 }
 0x840   :  { %v2043_v22 = vpop.eup %2042 }
 0x841   :  { %v1645_v16 = vmul.f32 %v2043_v22, %v1530_v51 }
 0x842   :  { %v2045_v3 = vpop.eup %2044 }
 0x843   :  { %v1647_v30 = vadd.f32 %v1646_v25, %v1645_v16 }
 0x845   :  { %2046 = vtanh.f32 %v1647_v30  ;;  %1656 = vst [vmem:[#allocation17] sm:$0xff] %v1647_v30 }
 0x852   :  { %v2047_v34 = vpop.eup %2046 }
 0x853   :  { %v1649_v20 = vmul.f32 %v2047_v34, %v2045_v3 }
 0x855   :  { %v1650_v26 = vpack.c.bf16 %v1649_v20, %v1649_v20  ;;  %1655 = vst [vmem:[#allocation15] sm:$0xff] %v1649_v20 }
 0x856   :  { %2191 = shalt.err (!%p2188_p1)
}
 0x857   :  { %1678 = dma.vmem_to_hbm [thread:$0]  %s1676_s29, 128, %s2873_s7, [#allocation16]   ;;  %1652 = vst [vmem:[#allocation14 + $0x1c] sm:$0xf] %v1650_v26 }
 0x858   :  { %s2200_s17 = scalar_lea.vmem %s1686_s9, 128  ;;  %p2205_p3 = scmp.lt.s32.totalorder %s1686_s9, %s1686_s9 }
 0x859   :  { %p2201_p2 = scmp.ne.s32.totalorder %s1686_s9, %s2200_s17  ;;  %p2206_p4 = scmp.lt.s32.totalorder %s2200_s17, %s2200_s17 }
 0x85b   :  { %p2207_p5 = por %p2206_p4, %p2205_p3 }
 0x85d   :  { %p2208_p6 = pnand %p2207_p5, %p2201_p2 }
 0x85f   :  { %2211 = shalt.err (!%p2208_p6)
}
 0x860   :  { %1688 = dma.vmem_to_hbm [thread:$0]  %s1686_s9, 128, %s2874_s8, [#allocation16]  }
 0x861   :  { %s2220_s19 = scalar_lea.vmem %s1663_s11, 512  ;;  %p2225_p8 = scmp.lt.s32.totalorder %s1663_s11, %s1663_s11 }
 0x862   :  { %p2221_p7 = scmp.ne.s32.totalorder %s1663_s11, %s2220_s19  ;;  %p2226_p9 = scmp.lt.s32.totalorder %s2220_s19, %s2220_s19 }
 0x864   :  { %p2227_p10 = por %p2226_p9, %p2225_p8 }
 0x866   :  { %p2228_p11 = pnand %p2227_p10, %p2221_p7 }
 0x868   :  { %2231 = shalt.err (!%p2228_p11)
}
 0x869   :  { %1668 = dma.vmem_to_hbm [thread:$0]  %s1663_s11, 512, %s2872_s6, [#allocation10], %s2254_s13, %s2254_s13, %s2255_s14  }
 0x86a   :  { %2248 = dma.done.wait [#allocation10], 512  }
 0x86b   :  { %2249 = vsyncadd [#allocation10], 4294966784 }
 0x86c   :  { %2250 = dma.done.wait [#allocation16], 256  }
 0x86d   :  { %2251 = vsyncadd [#allocation16], 4294967040 }
 0x86e   :  { %1698 = vsyncpa [#allocation9], 1 }
 0x86f   :  { %1699 = vsyncpa [#allocation12], 1 }
 0x870   :  { %1700 = vsyncpa [#allocation10], 1 }
 0x871   :  { %1701 = vsyncpa [#allocation16], 1 }
 0x872   :  { %1702 = vsyncmov [#allocation7] }
 0x875   :  { %s1703_s8 = vpop.sfrf %1702 }
 0x876   :  { %p1807_p12 = scmp.ne.s32.totalorder %s1703_s8, 0 }
 0x878   :  { %1707 = shalt.err (%p1807_p12)  }
 0x879   :  { %1709 = vsyncmov [#allocation7 + $0x1] }
 0x87c   :  { %s1710_s21 = vpop.sfrf %1709 }
 0x87d   :  { %p1808_p13 = scmp.ne.s32.totalorder %s1710_s21, 0 }
 0x87f   :  { %1714 = shalt.err (%p1808_p13)  }

</bundles_post_ra>
